<compile_context>
chip_gen: v5e
topology: v5e:2x2
jax: 0.10.0
libtpu: 0.0.40
codegen_flags: <defaults>
</compile_context>

<pallas_src>
import functools

import jax
import jax.numpy as jnp
from jax.experimental import pallas as pl
from jax.experimental.pallas import tpu as pltpu


DTYPE = jnp.bfloat16          # activation / weight storage dtype (MXU-friendly)
ACC_DTYPE = jnp.float32       # matmul accumulator dtype


def _vmem_limit_bytes():
    """Per-generation scoped-VMEM budget: ~3/4 of physical VMEM, capped at 100 MiB.
    -> ~96 MiB on v5e/v6e (128 MiB physical), ~48 MiB on v7x (64 MiB per TC)."""
    try:
        cap = pltpu.get_tpu_info().vmem_capacity_bytes
    except Exception:
        cap = 64 * 1024 * 1024
    return int(min(cap * 3 // 4, 100 * 1024 * 1024))


VMEM_LIMIT = _vmem_limit_bytes()


def _row_tile(m, target=512):
    """Largest row tile <= target that is a multiple of 16 (bf16 packs 16 rows per
    sublane group) and divides m; falls back to the full dimension when small."""
    if m <= target:
        return m
    t = (target // 16) * 16
    while t >= 16:
        if m % t == 0:
            return t
        t -= 16
    return m


# ----------------------------- Pallas kernels --------------------------------

def _layernorm_kernel(x_ref, g_ref, b_ref, o_ref, *, eps):
    h = x_ref[...].astype(jnp.float32)
    mean = jnp.mean(h, axis=-1, keepdims=True)
    var = jnp.mean((h - mean) * (h - mean), axis=-1, keepdims=True)
    norm = (h - mean) * jax.lax.rsqrt(var + eps)
    o_ref[...] = (norm * g_ref[...].astype(jnp.float32)
                  + b_ref[...].astype(jnp.float32)).astype(o_ref.dtype)


def layernorm(x, gamma, beta, eps=1e-12):
    """LayerNorm over the last (hidden) axis (used once, on the embeddings)."""
    M, H = x.shape
    tm = _row_tile(M)
    return pl.pallas_call(
        functools.partial(_layernorm_kernel, eps=eps),
        out_shape=jax.ShapeDtypeStruct((M, H), x.dtype),
        grid=(M // tm,),
        in_specs=[
            pl.BlockSpec((tm, H), lambda i: (i, 0)),
            pl.BlockSpec((1, H), lambda i: (0, 0)),
            pl.BlockSpec((1, H), lambda i: (0, 0)),
        ],
        out_specs=pl.BlockSpec((tm, H), lambda i: (i, 0)),
        compiler_params=pltpu.CompilerParams(
            dimension_semantics=("parallel",), vmem_limit_bytes=VMEM_LIMIT),
    )(x, gamma.reshape(1, H), beta.reshape(1, H))


def _attn_block_kernel(x_ref, wqkv_ref, bqkv_ref, wo_ref, bo_ref,
                       g_ref, bt_ref, o_ref, qkv_sc, ctx_sc,
                       *, nh, dh, hidden, scale, eps):
    """One batch per grid step: fused QKV projection + MHA + out-proj + residual + LN."""
    x = x_ref[0]                                                   # (S, H) bf16

    # Fused QKV projection (one (H, 3H) MXU matmul, f32 accumulate), held in VMEM.
    qkv = jnp.dot(x, wqkv_ref[...], preferred_element_type=jnp.float32)
    qkv_sc[...] = (qkv + bqkv_ref[...].astype(jnp.float32)).astype(qkv_sc.dtype)

    # Per-head attention (statically unrolled); each head's context is written
    # straight into its slice of one (S, H) f32 scratch -- no list/concatenate,
    # so only one head's f32 intermediates are live at a time.
    # TODO(synk): for long sequences replace the full (S, S) score matrix with a
    # KV-tiled online-softmax (flash) loop to cap VMEM.
    for h in range(nh):
        lo = h * dh
        q = qkv_sc[:, lo:lo + dh]                                  # (S, dh) bf16
        k = qkv_sc[:, hidden + lo:hidden + lo + dh]                # (S, dh) bf16
        v = qkv_sc[:, 2 * hidden + lo:2 * hidden + lo + dh]        # (S, dh) bf16
        # q @ k^T as a transposed contraction (no explicit XLU transpose).
        s = jax.lax.dot_general(q, k, (((1,), (1,)), ((), ())),
                                preferred_element_type=jnp.float32) * scale
        m = jnp.max(s, axis=-1, keepdims=True)
        p = jnp.exp(s - m)
        p = p / jnp.sum(p, axis=-1, keepdims=True)                 # exact softmax
        ctx_sc[:, lo:lo + dh] = jnp.dot(p.astype(v.dtype), v,
                                        preferred_element_type=jnp.float32)

    # Attention output projection + residual + LayerNorm (fused epilogue).
    y = jnp.dot(ctx_sc[...].astype(x.dtype), wo_ref[...],
                preferred_element_type=jnp.float32)
    y = y + bo_ref[...].astype(jnp.float32) + x.astype(jnp.float32)
    mean = jnp.mean(y, axis=-1, keepdims=True)
    var = jnp.mean((y - mean) * (y - mean), axis=-1, keepdims=True)
    norm = (y - mean) * jax.lax.rsqrt(var + eps)
    o_ref[0] = (norm * g_ref[...].astype(jnp.float32)
                + bt_ref[...].astype(jnp.float32)).astype(o_ref.dtype)


def attention_block(x, w_qkv, b_qkv, wo, bo, ln_g, ln_b, *,
                    num_heads, scale, eps=1e-12):
    """x: (B, S, H). Returns LayerNorm(x + MHA(x) @ Wo + bo) as (B, S, H)."""
    B, S, H = x.shape
    dh = H // num_heads
    return pl.pallas_call(
        functools.partial(_attn_block_kernel, nh=num_heads, dh=dh,
                          hidden=H, scale=scale, eps=eps),
        out_shape=jax.ShapeDtypeStruct((B, S, H), x.dtype),
        grid=(B,),
        in_specs=[
            pl.BlockSpec((1, S, H), lambda b: (b, 0, 0)),
            pl.BlockSpec((H, 3 * H), lambda b: (0, 0)),
            pl.BlockSpec((1, 3 * H), lambda b: (0, 0)),
            pl.BlockSpec((H, H), lambda b: (0, 0)),
            pl.BlockSpec((1, H), lambda b: (0, 0)),
            pl.BlockSpec((1, H), lambda b: (0, 0)),
            pl.BlockSpec((1, H), lambda b: (0, 0)),
        ],
        out_specs=pl.BlockSpec((1, S, H), lambda b: (b, 0, 0)),
        scratch_shapes=[pltpu.VMEM((S, 3 * H), x.dtype),    # fused QKV
                        pltpu.VMEM((S, H), ACC_DTYPE)],     # per-head context acc
        compiler_params=pltpu.CompilerParams(
            # batch axis is parallel: on v7x each of the 2 TensorCores takes a batch.
            dimension_semantics=("parallel",), vmem_limit_bytes=VMEM_LIMIT),
    )(x, w_qkv, b_qkv.reshape(1, 3 * H), wo, bo.reshape(1, H),
      ln_g.reshape(1, H), ln_b.reshape(1, H))


def _ffn_block_kernel(x_ref, w1_ref, b1_ref, w2_ref, b2_ref, g_ref, bt_ref,
                      o_ref, *, eps):
    """Fused FFN: y = LayerNorm(x + W2 gelu(W1 x + b1) + b2) for one row tile."""
    x = x_ref[...]                                                 # (tm, H) bf16
    h = jnp.dot(x, w1_ref[...], preferred_element_type=jnp.float32)
    h = h + b1_ref[...].astype(jnp.float32)
    # TODO(synk): HF BERT "gelu" is erf-based; tanh approximation used here.
    c = jnp.float32(0.7978845608028654)  # sqrt(2/pi)
    h = 0.5 * h * (1.0 + jnp.tanh(c * (h + 0.044715 * h * h * h)))
    y = jnp.dot(h.astype(x.dtype), w2_ref[...],
                preferred_element_type=jnp.float32)
    y = y + b2_ref[...].astype(jnp.float32) + x.astype(jnp.float32)
    mean = jnp.mean(y, axis=-1, keepdims=True)
    var = jnp.mean((y - mean) * (y - mean), axis=-1, keepdims=True)
    norm = (y - mean) * jax.lax.rsqrt(var + eps)
    o_ref[...] = (norm * g_ref[...].astype(jnp.float32)
                  + bt_ref[...].astype(jnp.float32)).astype(o_ref.dtype)


def ffn_block(x, w1, b1, w2, b2, ln_g, ln_b, eps=1e-12):
    """x: (M, H) token-major rows."""
    M, H = x.shape
    I = w1.shape[1]
    tm = _row_tile(M)
    return pl.pallas_call(
        functools.partial(_ffn_block_kernel, eps=eps),
        out_shape=jax.ShapeDtypeStruct((M, H), x.dtype),
        grid=(M // tm,),
        in_specs=[
            pl.BlockSpec((tm, H), lambda i: (i, 0)),
            pl.BlockSpec((H, I), lambda i: (0, 0)),
            pl.BlockSpec((1, I), lambda i: (0, 0)),
            pl.BlockSpec((I, H), lambda i: (0, 0)),
            pl.BlockSpec((1, H), lambda i: (0, 0)),
            pl.BlockSpec((1, H), lambda i: (0, 0)),
            pl.BlockSpec((1, H), lambda i: (0, 0)),
        ],
        out_specs=pl.BlockSpec((tm, H), lambda i: (i, 0)),
        compiler_params=pltpu.CompilerParams(
            dimension_semantics=("parallel",), vmem_limit_bytes=VMEM_LIMIT),
    )(x, w1, b1.reshape(1, I), w2, b2.reshape(1, H),
      ln_g.reshape(1, H), ln_b.reshape(1, H))


def _head_kernel(cls_ref, pw_ref, pb_ref, dw_ref, db_ref, logit_ref):
    """Fused BERT pooler (tanh linear on CLS) + lane-padded classifier linear."""
    cls = cls_ref[...]
    pooled = jnp.tanh(jnp.dot(cls, pw_ref[...],
                              preferred_element_type=jnp.float32)
                      + pb_ref[...].astype(jnp.float32))
    logit = (jnp.dot(pooled.astype(dw_ref.dtype), dw_ref[...],
                     preferred_element_type=jnp.float32)
             + db_ref[...].astype(jnp.float32))
    logit_ref[...] = logit.astype(logit_ref.dtype)


def pooler_classifier(cls, pool_w, pool_b, dense_w_pad, dense_b_pad):
    """cls: (B, H) -> logits (B, Cp) f32 with Cp a multiple of 128 (lane-dense)."""
    B, H = cls.shape
    Cp = dense_w_pad.shape[1]
    return pl.pallas_call(
        _head_kernel,
        out_shape=jax.ShapeDtypeStruct((B, Cp), jnp.float32),
        grid=(1,),
        in_specs=[
            pl.BlockSpec((B, H), lambda i: (0, 0)),
            pl.BlockSpec((H, H), lambda i: (0, 0)),
            pl.BlockSpec((1, H), lambda i: (0, 0)),
            pl.BlockSpec((H, Cp), lambda i: (0, 0)),
            pl.BlockSpec((1, Cp), lambda i: (0, 0)),
        ],
        out_specs=pl.BlockSpec((B, Cp), lambda i: (0, 0)),
        compiler_params=pltpu.CompilerParams(vmem_limit_bytes=VMEM_LIMIT),
    )(cls, pool_w, pool_b.reshape(1, H), dense_w_pad, dense_b_pad.reshape(1, Cp))


# ------------------------------ Parameters ----------------------------------

CFG = dict(
    vocab_size=50,
    type_vocab_size=2,
    max_position=16,
    hidden=32,
    heads=4,
    intermediate=64,
    num_layers=2,
    num_classes=3,
)


def _dense_init(key, fan_in, fan_out):
    kw, _ = jax.random.split(key)
    w = 0.02 * jax.random.normal(kw, (fan_in, fan_out), jnp.float32)
    b = jnp.zeros((fan_out,), jnp.float32)
    return w, b


def init_params(key, cfg, dtype=DTYPE):
    H, I = cfg["hidden"], cfg["intermediate"]
    keys = iter(jax.random.split(key, 64))
    params = {
        "emb": {
            "word": (0.02 * jax.random.normal(next(keys), (cfg["vocab_size"], H))).astype(dtype),
            "pos": (0.02 * jax.random.normal(next(keys), (cfg["max_position"], H))).astype(dtype),
            "type": (0.02 * jax.random.normal(next(keys), (cfg["type_vocab_size"], H))).astype(dtype),
            "ln_g": jnp.ones((H,), dtype),
            "ln_b": jnp.zeros((H,), dtype),
        },
        "layers": [],
    }
    for _ in range(cfg["num_layers"]):
        layer = {}
        wq, bq = _dense_init(next(keys), H, H)
        wk, bk = _dense_init(next(keys), H, H)
        wv, bv = _dense_init(next(keys), H, H)
        # Fused QKV projection: one (H, 3H) matmul per layer.
        layer["w_qkv"] = jnp.concatenate([wq, wk, wv], axis=1).astype(dtype)
        layer["b_qkv"] = jnp.concatenate([bq, bk, bv]).astype(dtype)
        wo, bo = _dense_init(next(keys), H, H)
        layer["wo"], layer["bo"] = wo.astype(dtype), bo.astype(dtype)
        layer["ln1_g"] = jnp.ones((H,), dtype)
        layer["ln1_b"] = jnp.zeros((H,), dtype)
        w1, b1 = _dense_init(next(keys), H, I)
        w2, b2 = _dense_init(next(keys), I, H)
        layer["w1"], layer["b1"] = w1.astype(dtype), b1.astype(dtype)
        layer["w2"], layer["b2"] = w2.astype(dtype), b2.astype(dtype)
        layer["ln2_g"] = jnp.ones((H,), dtype)
        layer["ln2_b"] = jnp.zeros((H,), dtype)
        params["layers"].append(layer)
    pw, pb = _dense_init(next(keys), H, H)
    dw, db = _dense_init(next(keys), H, cfg["num_classes"])
    # Lane-pad the classifier to a 128-wide output so the head kernel's store is
    # unmasked (lane-dense); real logits are sliced out after the call.
    Cp = ((cfg["num_classes"] + 127) // 128) * 128
    dw_p = jnp.zeros((H, Cp), jnp.float32).at[:, :cfg["num_classes"]].set(dw)
    db_p = jnp.zeros((Cp,), jnp.float32).at[:cfg["num_classes"]].set(db)
    params["pool_w"], params["pool_b"] = pw.astype(dtype), pb.astype(dtype)
    params["dense_w"], params["dense_b"] = dw_p.astype(dtype), db_p.astype(dtype)
    return params


# ------------------------------ Model forward --------------------------------

def bert_forward(params, input_ids, segment_ids, cfg):
    B, S = input_ids.shape
    H = cfg["hidden"]
    nh = cfg["heads"]
    dh = H // nh
    scale = 1.0 / (dh ** 0.5)

    emb = params["emb"]
    pos_ids = jnp.arange(S)
    x = (emb["word"][input_ids]
         + emb["pos"][pos_ids][None, :, :]
         + emb["type"][segment_ids])                       # (B, S, H)
    x = layernorm(x.reshape(B * S, H).astype(DTYPE), emb["ln_g"], emb["ln_b"])
    x = x.reshape(B, S, H)

    for layer in params["layers"]:
        # Fused: QKV projection + MHA + out-proj + residual + LayerNorm (no mask).
        x = attention_block(x, layer["w_qkv"], layer["b_qkv"],
                            layer["wo"], layer["bo"],
                            layer["ln1_g"], layer["ln1_b"],
                            num_heads=nh, scale=scale)
        # Fused: W1 + GELU + W2 + residual + LayerNorm.
        x = ffn_block(x.reshape(B * S, H), layer["w1"], layer["b1"],
                      layer["w2"], layer["b2"],
                      layer["ln2_g"], layer["ln2_b"]).reshape(B, S, H)

    return x                                               # sequence output (outputs[0])


def pure_bert_forward(params, input_cat_ids_batch, segment_ids_batch,
                      dep_tags_batch, dep_pos_batch, dep_dist_batch,
                      mt_idx, sent_idx, cfg=CFG):
    # dep_tags_batch / dep_pos_batch / dep_dist_batch / mt_idx / sent_idx are
    # accepted but unused, exactly as in the PyTorch module's forward.
    del dep_tags_batch, dep_pos_batch, dep_dist_batch, mt_idx, sent_idx
    hidden = bert_forward(params, input_cat_ids_batch, segment_ids_batch, cfg)
    cls = hidden[:, 0, :]                                  # (B, H) CLS rows
    # Fused pooler (tanh) + classifier; dropout_bert is never applied in the
    # reference forward (eval mode), only self.dense.
    logits_pad = pooler_classifier(cls, params["pool_w"], params["pool_b"],
                                   params["dense_w"], params["dense_b"])
    return logits_pad[:, :cfg["num_classes"]]


# ----------------------------------- Main ------------------------------------

if __name__ == "__main__":
    B, S = 2, 8
    key = jax.random.PRNGKey(0)
    k_par, k_ids, k_seg, k_dep = jax.random.split(key, 4)

    params = init_params(k_par, CFG)

    input_cat_ids_batch = jax.random.randint(k_ids, (B, S), 0, CFG["vocab_size"], jnp.int32)
    segment_ids_batch = jax.random.randint(k_seg, (B, S), 0, CFG["type_vocab_size"], jnp.int32)
    # Unused auxiliary inputs (kept for signature fidelity).
    dep_tags_batch = jax.random.randint(k_dep, (B, S), 0, 10, jnp.int32)
    dep_pos_batch = jnp.zeros((B, S), jnp.int32)
    dep_dist_batch = jnp.zeros((B, S), jnp.int32)
    mt_idx = jnp.zeros((B,), jnp.int32)
    sent_idx = jnp.zeros((B,), jnp.int32)

    # jit the whole forward: one compiled XLA program instead of eager per-kernel dispatch.
    forward = jax.jit(functools.partial(pure_bert_forward, cfg=CFG))

    logits = forward(params, input_cat_ids_batch, segment_ids_batch,
                     dep_tags_batch, dep_pos_batch, dep_dist_batch,
                     mt_idx, sent_idx)
    jax.block_until_ready(logits)
    assert logits.shape == (B, CFG["num_classes"])
    assert bool(jnp.all(jnp.isfinite(logits)))
    print("KERNEL_OK")
</pallas_src>

<mosaic_0001>
module attributes {stable_mosaic.version = 11 : i64} {
  func.func @_layernorm_kernel(%arg0: i32, %arg1: memref<16x32xbf16, #tpu.memory_space<vmem>>, %arg2: memref<1x32xbf16, #tpu.memory_space<vmem>>, %arg3: memref<1x32xbf16, #tpu.memory_space<vmem>>, %arg4: memref<16x32xbf16, #tpu.memory_space<vmem>>) attributes {dimension_semantics = [#tpu.dimension_semantics<parallel>], iteration_bounds = array<i64: 1>, scalar_prefetch = 0 : i64, scratch_operands = 0 : i64, tpu.core_type = #tpu.core_type<tc>, window_params = [{transform_indices = @transform_0, window_bounds = array<i64: 16, 32>}, {pipeline_mode = #tpu.pipeline_mode<synchronous>, transform_indices = @transform_1, window_bounds = array<i64: 1, 32>}, {pipeline_mode = #tpu.pipeline_mode<synchronous>, transform_indices = @transform_2, window_bounds = array<i64: 1, 32>}, {transform_indices = @transform_3, window_bounds = array<i64: 16, 32>}]} {
    %c0 = arith.constant 0 : index
    %c0_0 = arith.constant 0 : index
    %0 = vector.load %arg1[%c0, %c0_0] : memref<16x32xbf16, #tpu.memory_space<vmem>>, vector<16x32xbf16>
    %1 = arith.extf %0 : vector<16x32xbf16> to vector<16x32xf32>
    %cst = arith.constant dense<0.000000e+00> : vector<16xf32>
    %2 = vector.multi_reduction <add>, %1, %cst [1] : vector<16x32xf32> to vector<16xf32>
    %3 = vector.shape_cast %2 : vector<16xf32> to vector<16x1xf32>
    %cst_1 = arith.constant 3.200000e+01 : f32
    %4 = vector.broadcast %cst_1 : f32 to vector<16x1xf32>
    %5 = arith.divf %3, %4 : vector<16x1xf32>
    %6 = vector.broadcast %5 : vector<16x1xf32> to vector<16x32xf32>
    %7 = arith.subf %1, %6 : vector<16x32xf32>
    %8 = vector.broadcast %5 : vector<16x1xf32> to vector<16x32xf32>
    %9 = arith.subf %1, %8 : vector<16x32xf32>
    %10 = arith.mulf %7, %9 : vector<16x32xf32>
    %cst_2 = arith.constant dense<0.000000e+00> : vector<16xf32>
    %11 = vector.multi_reduction <add>, %10, %cst_2 [1] : vector<16x32xf32> to vector<16xf32>
    %12 = vector.shape_cast %11 : vector<16xf32> to vector<16x1xf32>
    %cst_3 = arith.constant 3.200000e+01 : f32
    %13 = vector.broadcast %cst_3 : f32 to vector<16x1xf32>
    %14 = arith.divf %12, %13 : vector<16x1xf32>
    %15 = vector.broadcast %5 : vector<16x1xf32> to vector<16x32xf32>
    %16 = arith.subf %1, %15 : vector<16x32xf32>
    %cst_4 = arith.constant 9.99999996E-13 : f32
    %17 = vector.broadcast %cst_4 : f32 to vector<16x1xf32>
    %18 = arith.addf %14, %17 : vector<16x1xf32>
    %19 = math.rsqrt %18 : vector<16x1xf32>
    %20 = vector.broadcast %19 : vector<16x1xf32> to vector<16x32xf32>
    %21 = arith.mulf %16, %20 : vector<16x32xf32>
    %c0_5 = arith.constant 0 : index
    %c0_6 = arith.constant 0 : index
    %22 = vector.load %arg2[%c0_5, %c0_6] : memref<1x32xbf16, #tpu.memory_space<vmem>>, vector<1x32xbf16>
    %23 = arith.extf %22 : vector<1x32xbf16> to vector<1x32xf32>
    %24 = vector.broadcast %23 : vector<1x32xf32> to vector<16x32xf32>
    %25 = arith.mulf %21, %24 : vector<16x32xf32>
    %c0_7 = arith.constant 0 : index
    %c0_8 = arith.constant 0 : index
    %26 = vector.load %arg3[%c0_7, %c0_8] : memref<1x32xbf16, #tpu.memory_space<vmem>>, vector<1x32xbf16>
    %27 = arith.extf %26 : vector<1x32xbf16> to vector<1x32xf32>
    %28 = vector.broadcast %27 : vector<1x32xf32> to vector<16x32xf32>
    %29 = arith.addf %25, %28 : vector<16x32xf32>
    %30 = arith.truncf %29 : vector<16x32xf32> to vector<16x32xbf16>
    %c0_9 = arith.constant 0 : index
    %c0_10 = arith.constant 0 : index
    %31 = vector.load %arg4[%c0_9, %c0_10] : memref<16x32xbf16, #tpu.memory_space<vmem>>, vector<16x32xbf16>
    tpu.vector_store %arg4[%c0_9, %c0_10], %30 {strides = array<i32>} : memref<16x32xbf16, #tpu.memory_space<vmem>>, vector<16x32xbf16>,
    return
  }
  func.func @transform_0(%arg0: i32) -> (i32, i32) {
    %c0_i32 = arith.constant 0 : i32
    %c0_i32_0 = arith.constant 0 : i32
    return %arg0, %c0_i32 : i32, i32
  }
  func.func @transform_1(%arg0: i32) -> (i32, i32) {
    %c0_i32 = arith.constant 0 : i32
    %c0_i32_0 = arith.constant 0 : i32
    %c0_i32_1 = arith.constant 0 : i32
    return %c0_i32, %c0_i32_0 : i32, i32
  }
  func.func @transform_2(%arg0: i32) -> (i32, i32) {
    %c0_i32 = arith.constant 0 : i32
    %c0_i32_0 = arith.constant 0 : i32
    %c0_i32_1 = arith.constant 0 : i32
    return %c0_i32, %c0_i32_0 : i32, i32
  }
  func.func @transform_3(%arg0: i32) -> (i32, i32) {
    %c0_i32 = arith.constant 0 : i32
    %c0_i32_0 = arith.constant 0 : i32
    return %arg0, %c0_i32 : i32, i32
  }
}

module attributes {stable_mosaic.version = 11 : i64} {
  func.func @_attn_block_kernel(%arg0: i32, %arg1: memref<1x8x32xbf16, #tpu.memory_space<vmem>>, %arg2: memref<32x96xbf16, #tpu.memory_space<vmem>>, %arg3: memref<1x96xbf16, #tpu.memory_space<vmem>>, %arg4: memref<32x32xbf16, #tpu.memory_space<vmem>>, %arg5: memref<1x32xbf16, #tpu.memory_space<vmem>>, %arg6: memref<1x32xbf16, #tpu.memory_space<vmem>>, %arg7: memref<1x32xbf16, #tpu.memory_space<vmem>>, %arg8: memref<1x8x32xbf16, #tpu.memory_space<vmem>>, %arg9: memref<8x96xbf16, #tpu.memory_space<vmem>>, %arg10: memref<8x32xf32, #tpu.memory_space<vmem>>) attributes {dimension_semantics = [#tpu.dimension_semantics<parallel>], iteration_bounds = array<i64: 2>, scalar_prefetch = 0 : i64, scratch_operands = 2 : i64, tpu.core_type = #tpu.core_type<tc>, window_params = [{transform_indices = @transform_0, window_bounds = array<i64: 1, 8, 32>}, {pipeline_mode = #tpu.pipeline_mode<synchronous>, transform_indices = @transform_1, window_bounds = array<i64: 32, 96>}, {pipeline_mode = #tpu.pipeline_mode<synchronous>, transform_indices = @transform_2, window_bounds = array<i64: 1, 96>}, {pipeline_mode = #tpu.pipeline_mode<synchronous>, transform_indices = @transform_3, window_bounds = array<i64: 32, 32>}, {pipeline_mode = #tpu.pipeline_mode<synchronous>, transform_indices = @transform_4, window_bounds = array<i64: 1, 32>}, {pipeline_mode = #tpu.pipeline_mode<synchronous>, transform_indices = @transform_5, window_bounds = array<i64: 1, 32>}, {pipeline_mode = #tpu.pipeline_mode<synchronous>, transform_indices = @transform_6, window_bounds = array<i64: 1, 32>}, {transform_indices = @transform_7, window_bounds = array<i64: 1, 8, 32>}]} {
    %c0 = arith.constant 0 : index
    %c0_0 = arith.constant 0 : index
    %c0_1 = arith.constant 0 : index
    %0 = vector.load %arg1[%c0, %c0_0, %c0_1] : memref<1x8x32xbf16, #tpu.memory_space<vmem>>, vector<1x8x32xbf16>
    %1 = vector.shape_cast %0 : vector<1x8x32xbf16> to vector<8x32xbf16>
    %c0_2 = arith.constant 0 : index
    %c0_3 = arith.constant 0 : index
    %2 = vector.load %arg2[%c0_2, %c0_3] : memref<32x96xbf16, #tpu.memory_space<vmem>>, vector<32x96xbf16>
    %cst = arith.constant dense<0.000000e+00> : vector<8x96xf32>
    %3 = tpu.matmul %1, %2, %cst {dimension_numbers = #tpu.dot_dimension_numbers<[1], [0], [0], [1], [0, 0, 1, 1], [], []>} : vector<8x32xbf16>, vector<32x96xbf16>, vector<8x96xf32> -> vector<8x96xf32>
    %c0_4 = arith.constant 0 : index
    %c0_5 = arith.constant 0 : index
    %4 = vector.load %arg3[%c0_4, %c0_5] : memref<1x96xbf16, #tpu.memory_space<vmem>>, vector<1x96xbf16>
    %5 = arith.extf %4 : vector<1x96xbf16> to vector<1x96xf32>
    %6 = vector.broadcast %5 : vector<1x96xf32> to vector<8x96xf32>
    %7 = arith.addf %3, %6 : vector<8x96xf32>
    %8 = arith.truncf %7 : vector<8x96xf32> to vector<8x96xbf16>
    %c0_6 = arith.constant 0 : index
    %c0_7 = arith.constant 0 : index
    %9 = vector.load %arg9[%c0_6, %c0_7] : memref<8x96xbf16, #tpu.memory_space<vmem>>, vector<8x96xbf16>
    tpu.vector_store %arg9[%c0_6, %c0_7], %8 {strides = array<i32>} : memref<8x96xbf16, #tpu.memory_space<vmem>>, vector<8x96xbf16>,
    %c0_8 = arith.constant 0 : index
    %c0_9 = arith.constant 0 : index
    %10 = vector.load %arg9[%c0_8, %c0_9] : memref<8x96xbf16, #tpu.memory_space<vmem>>, vector<8x8xbf16>
    %c0_10 = arith.constant 0 : index
    %c32 = arith.constant 32 : index
    %11 = vector.load %arg9[%c0_10, %c32] : memref<8x96xbf16, #tpu.memory_space<vmem>>, vector<8x8xbf16>
    %c0_11 = arith.constant 0 : index
    %c64 = arith.constant 64 : index
    %12 = vector.load %arg9[%c0_11, %c64] : memref<8x96xbf16, #tpu.memory_space<vmem>>, vector<8x8xbf16>
    %cst_12 = arith.constant dense<0.000000e+00> : vector<8x8xf32>
    %13 = tpu.matmul %10, %11, %cst_12 {dimension_numbers = #tpu.dot_dimension_numbers<[1], [1], [0], [0], [0, 0, 1, 0], [], []>} : vector<8x8xbf16>, vector<8x8xbf16>, vector<8x8xf32> -> vector<8x8xf32>
    %cst_13 = arith.constant 0.353553385 : f32
    %14 = vector.broadcast %cst_13 : f32 to vector<8x8xf32>
    %15 = arith.mulf %13, %14 : vector<8x8xf32>
    %cst_14 = arith.constant dense<0xFF800000> : vector<8xf32>
    %16 = vector.multi_reduction <maximumf>, %15, %cst_14 [1] : vector<8x8xf32> to vector<8xf32>
    %17 = vector.shape_cast %16 : vector<8xf32> to vector<8x1xf32>
    %18 = vector.broadcast %17 : vector<8x1xf32> to vector<8x8xf32>
    %19 = arith.subf %15, %18 : vector<8x8xf32>
    %20 = math.exp %19 : vector<8x8xf32>
    %cst_15 = arith.constant dense<0.000000e+00> : vector<8xf32>
    %21 = vector.multi_reduction <add>, %20, %cst_15 [1] : vector<8x8xf32> to vector<8xf32>
    %22 = vector.shape_cast %21 : vector<8xf32> to vector<8x1xf32>
    %23 = vector.broadcast %22 : vector<8x1xf32> to vector<8x8xf32>
    %24 = arith.divf %20, %23 : vector<8x8xf32>
    %25 = arith.truncf %24 : vector<8x8xf32> to vector<8x8xbf16>
    %cst_16 = arith.constant dense<0.000000e+00> : vector<8x8xf32>
    %26 = tpu.matmul %25, %12, %cst_16 {dimension_numbers = #tpu.dot_dimension_numbers<[1], [0], [0], [1], [0, 0, 1, 1], [], []>} : vector<8x8xbf16>, vector<8x8xbf16>, vector<8x8xf32> -> vector<8x8xf32>
    %c0_17 = arith.constant 0 : index
    %c0_18 = arith.constant 0 : index
    %27 = vector.load %arg10[%c0_17, %c0_18] : memref<8x32xf32, #tpu.memory_space<vmem>>, vector<8x8xf32>
    tpu.vector_store %arg10[%c0_17, %c0_18], %26 {strides = array<i32>} : memref<8x32xf32, #tpu.memory_space<vmem>>, vector<8x8xf32>,
    %c0_19 = arith.constant 0 : index
    %c8 = arith.constant 8 : index
    %28 = vector.load %arg9[%c0_19, %c8] : memref<8x96xbf16, #tpu.memory_space<vmem>>, vector<8x8xbf16>
    %c0_20 = arith.constant 0 : index
    %c40 = arith.constant 40 : index
    %29 = vector.load %arg9[%c0_20, %c40] : memref<8x96xbf16, #tpu.memory_space<vmem>>, vector<8x8xbf16>
    %c0_21 = arith.constant 0 : index
    %c72 = arith.constant 72 : index
    %30 = vector.load %arg9[%c0_21, %c72] : memref<8x96xbf16, #tpu.memory_space<vmem>>, vector<8x8xbf16>
    %cst_22 = arith.constant dense<0.000000e+00> : vector<8x8xf32>
    %31 = tpu.matmul %28, %29, %cst_22 {dimension_numbers = #tpu.dot_dimension_numbers<[1], [1], [0], [0], [0, 0, 1, 0], [], []>} : vector<8x8xbf16>, vector<8x8xbf16>, vector<8x8xf32> -> vector<8x8xf32>
    %cst_23 = arith.constant 0.353553385 : f32
    %32 = vector.broadcast %cst_23 : f32 to vector<8x8xf32>
    %33 = arith.mulf %31, %32 : vector<8x8xf32>
    %cst_24 = arith.constant dense<0xFF800000> : vector<8xf32>
    %34 = vector.multi_reduction <maximumf>, %33, %cst_24 [1] : vector<8x8xf32> to vector<8xf32>
    %35 = vector.shape_cast %34 : vector<8xf32> to vector<8x1xf32>
    %36 = vector.broadcast %35 : vector<8x1xf32> to vector<8x8xf32>
    %37 = arith.subf %33, %36 : vector<8x8xf32>
    %38 = math.exp %37 : vector<8x8xf32>
    %cst_25 = arith.constant dense<0.000000e+00> : vector<8xf32>
    %39 = vector.multi_reduction <add>, %38, %cst_25 [1] : vector<8x8xf32> to vector<8xf32>
    %40 = vector.shape_cast %39 : vector<8xf32> to vector<8x1xf32>
    %41 = vector.broadcast %40 : vector<8x1xf32> to vector<8x8xf32>
    %42 = arith.divf %38, %41 : vector<8x8xf32>
    %43 = arith.truncf %42 : vector<8x8xf32> to vector<8x8xbf16>
    %cst_26 = arith.constant dense<0.000000e+00> : vector<8x8xf32>
    %44 = tpu.matmul %43, %30, %cst_26 {dimension_numbers = #tpu.dot_dimension_numbers<[1], [0], [0], [1], [0, 0, 1, 1], [], []>} : vector<8x8xbf16>, vector<8x8xbf16>, vector<8x8xf32> -> vector<8x8xf32>
    %c0_27 = arith.constant 0 : index
    %c8_28 = arith.constant 8 : index
    %45 = vector.load %arg10[%c0_27, %c8_28] : memref<8x32xf32, #tpu.memory_space<vmem>>, vector<8x8xf32>
    tpu.vector_store %arg10[%c0_27, %c8_28], %44 {strides = array<i32>} : memref<8x32xf32, #tpu.memory_space<vmem>>, vector<8x8xf32>,
    %c0_29 = arith.constant 0 : index
    %c16 = arith.constant 16 : index
    %46 = vector.load %arg9[%c0_29, %c16] : memref<8x96xbf16, #tpu.memory_space<vmem>>, vector<8x8xbf16>
    %c0_30 = arith.constant 0 : index
    %c48 = arith.constant 48 : index
    %47 = vector.load %arg9[%c0_30, %c48] : memref<8x96xbf16, #tpu.memory_space<vmem>>, vector<8x8xbf16>
    %c0_31 = arith.constant 0 : index
    %c80 = arith.constant 80 : index
    %48 = vector.load %arg9[%c0_31, %c80] : memref<8x96xbf16, #tpu.memory_space<vmem>>, vector<8x8xbf16>
    %cst_32 = arith.constant dense<0.000000e+00> : vector<8x8xf32>
    %49 = tpu.matmul %46, %47, %cst_32 {dimension_numbers = #tpu.dot_dimension_numbers<[1], [1], [0], [0], [0, 0, 1, 0], [], []>} : vector<8x8xbf16>, vector<8x8xbf16>, vector<8x8xf32> -> vector<8x8xf32>
    %cst_33 = arith.constant 0.353553385 : f32
    %50 = vector.broadcast %cst_33 : f32 to vector<8x8xf32>
    %51 = arith.mulf %49, %50 : vector<8x8xf32>
    %cst_34 = arith.constant dense<0xFF800000> : vector<8xf32>
    %52 = vector.multi_reduction <maximumf>, %51, %cst_34 [1] : vector<8x8xf32> to vector<8xf32>
    %53 = vector.shape_cast %52 : vector<8xf32> to vector<8x1xf32>
    %54 = vector.broadcast %53 : vector<8x1xf32> to vector<8x8xf32>
    %55 = arith.subf %51, %54 : vector<8x8xf32>
    %56 = math.exp %55 : vector<8x8xf32>
    %cst_35 = arith.constant dense<0.000000e+00> : vector<8xf32>
    %57 = vector.multi_reduction <add>, %56, %cst_35 [1] : vector<8x8xf32> to vector<8xf32>
    %58 = vector.shape_cast %57 : vector<8xf32> to vector<8x1xf32>
    %59 = vector.broadcast %58 : vector<8x1xf32> to vector<8x8xf32>
    %60 = arith.divf %56, %59 : vector<8x8xf32>
    %61 = arith.truncf %60 : vector<8x8xf32> to vector<8x8xbf16>
    %cst_36 = arith.constant dense<0.000000e+00> : vector<8x8xf32>
    %62 = tpu.matmul %61, %48, %cst_36 {dimension_numbers = #tpu.dot_dimension_numbers<[1], [0], [0], [1], [0, 0, 1, 1], [], []>} : vector<8x8xbf16>, vector<8x8xbf16>, vector<8x8xf32> -> vector<8x8xf32>
    %c0_37 = arith.constant 0 : index
    %c16_38 = arith.constant 16 : index
    %63 = vector.load %arg10[%c0_37, %c16_38] : memref<8x32xf32, #tpu.memory_space<vmem>>, vector<8x8xf32>
    tpu.vector_store %arg10[%c0_37, %c16_38], %62 {strides = array<i32>} : memref<8x32xf32, #tpu.memory_space<vmem>>, vector<8x8xf32>,
    %c0_39 = arith.constant 0 : index
    %c24 = arith.constant 24 : index
    %64 = vector.load %arg9[%c0_39, %c24] : memref<8x96xbf16, #tpu.memory_space<vmem>>, vector<8x8xbf16>
    %c0_40 = arith.constant 0 : index
    %c56 = arith.constant 56 : index
    %65 = vector.load %arg9[%c0_40, %c56] : memref<8x96xbf16, #tpu.memory_space<vmem>>, vector<8x8xbf16>
    %c0_41 = arith.constant 0 : index
    %c88 = arith.constant 88 : index
    %66 = vector.load %arg9[%c0_41, %c88] : memref<8x96xbf16, #tpu.memory_space<vmem>>, vector<8x8xbf16>
    %cst_42 = arith.constant dense<0.000000e+00> : vector<8x8xf32>
    %67 = tpu.matmul %64, %65, %cst_42 {dimension_numbers = #tpu.dot_dimension_numbers<[1], [1], [0], [0], [0, 0, 1, 0], [], []>} : vector<8x8xbf16>, vector<8x8xbf16>, vector<8x8xf32> -> vector<8x8xf32>
    %cst_43 = arith.constant 0.353553385 : f32
    %68 = vector.broadcast %cst_43 : f32 to vector<8x8xf32>
    %69 = arith.mulf %67, %68 : vector<8x8xf32>
    %cst_44 = arith.constant dense<0xFF800000> : vector<8xf32>
    %70 = vector.multi_reduction <maximumf>, %69, %cst_44 [1] : vector<8x8xf32> to vector<8xf32>
    %71 = vector.shape_cast %70 : vector<8xf32> to vector<8x1xf32>
    %72 = vector.broadcast %71 : vector<8x1xf32> to vector<8x8xf32>
    %73 = arith.subf %69, %72 : vector<8x8xf32>
    %74 = math.exp %73 : vector<8x8xf32>
    %cst_45 = arith.constant dense<0.000000e+00> : vector<8xf32>
    %75 = vector.multi_reduction <add>, %74, %cst_45 [1] : vector<8x8xf32> to vector<8xf32>
    %76 = vector.shape_cast %75 : vector<8xf32> to vector<8x1xf32>
    %77 = vector.broadcast %76 : vector<8x1xf32> to vector<8x8xf32>
    %78 = arith.divf %74, %77 : vector<8x8xf32>
    %79 = arith.truncf %78 : vector<8x8xf32> to vector<8x8xbf16>
    %cst_46 = arith.constant dense<0.000000e+00> : vector<8x8xf32>
    %80 = tpu.matmul %79, %66, %cst_46 {dimension_numbers = #tpu.dot_dimension_numbers<[1], [0], [0], [1], [0, 0, 1, 1], [], []>} : vector<8x8xbf16>, vector<8x8xbf16>, vector<8x8xf32> -> vector<8x8xf32>
    %c0_47 = arith.constant 0 : index
    %c24_48 = arith.constant 24 : index
    %81 = vector.load %arg10[%c0_47, %c24_48] : memref<8x32xf32, #tpu.memory_space<vmem>>, vector<8x8xf32>
    tpu.vector_store %arg10[%c0_47, %c24_48], %80 {strides = array<i32>} : memref<8x32xf32, #tpu.memory_space<vmem>>, vector<8x8xf32>,
    %c0_49 = arith.constant 0 : index
    %c0_50 = arith.constant 0 : index
    %82 = vector.load %arg10[%c0_49, %c0_50] : memref<8x32xf32, #tpu.memory_space<vmem>>, vector<8x32xf32>
    %83 = arith.truncf %82 : vector<8x32xf32> to vector<8x32xbf16>
    %c0_51 = arith.constant 0 : index
    %c0_52 = arith.constant 0 : index
    %84 = vector.load %arg4[%c0_51, %c0_52] : memref<32x32xbf16, #tpu.memory_space<vmem>>, vector<32x32xbf16>
    %cst_53 = arith.constant dense<0.000000e+00> : vector<8x32xf32>
    %85 = tpu.matmul %83, %84, %cst_53 {dimension_numbers = #tpu.dot_dimension_numbers<[1], [0], [0], [1], [0, 0, 1, 1], [], []>} : vector<8x32xbf16>, vector<32x32xbf16>, vector<8x32xf32> -> vector<8x32xf32>
    %c0_54 = arith.constant 0 : index
    %c0_55 = arith.constant 0 : index
    %86 = vector.load %arg5[%c0_54, %c0_55] : memref<1x32xbf16, #tpu.memory_space<vmem>>, vector<1x32xbf16>
    %87 = arith.extf %86 : vector<1x32xbf16> to vector<1x32xf32>
    %88 = vector.broadcast %87 : vector<1x32xf32> to vector<8x32xf32>
    %89 = arith.addf %85, %88 : vector<8x32xf32>
    %90 = arith.extf %1 : vector<8x32xbf16> to vector<8x32xf32>
    %91 = arith.addf %89, %90 : vector<8x32xf32>
    %cst_56 = arith.constant dense<0.000000e+00> : vector<8xf32>
    %92 = vector.multi_reduction <add>, %91, %cst_56 [1] : vector<8x32xf32> to vector<8xf32>
    %93 = vector.shape_cast %92 : vector<8xf32> to vector<8x1xf32>
    %cst_57 = arith.constant 3.200000e+01 : f32
    %94 = vector.broadcast %cst_57 : f32 to vector<8x1xf32>
    %95 = arith.divf %93, %94 : vector<8x1xf32>
    %96 = vector.broadcast %95 : vector<8x1xf32> to vector<8x32xf32>
    %97 = arith.subf %91, %96 : vector<8x32xf32>
    %98 = vector.broadcast %95 : vector<8x1xf32> to vector<8x32xf32>
    %99 = arith.subf %91, %98 : vector<8x32xf32>
    %100 = arith.mulf %97, %99 : vector<8x32xf32>
    %cst_58 = arith.constant dense<0.000000e+00> : vector<8xf32>
    %101 = vector.multi_reduction <add>, %100, %cst_58 [1] : vector<8x32xf32> to vector<8xf32>
    %102 = vector.shape_cast %101 : vector<8xf32> to vector<8x1xf32>
    %cst_59 = arith.constant 3.200000e+01 : f32
    %103 = vector.broadcast %cst_59 : f32 to vector<8x1xf32>
    %104 = arith.divf %102, %103 : vector<8x1xf32>
    %105 = vector.broadcast %95 : vector<8x1xf32> to vector<8x32xf32>
    %106 = arith.subf %91, %105 : vector<8x32xf32>
    %cst_60 = arith.constant 9.99999996E-13 : f32
    %107 = vector.broadcast %cst_60 : f32 to vector<8x1xf32>
    %108 = arith.addf %104, %107 : vector<8x1xf32>
    %109 = math.rsqrt %108 : vector<8x1xf32>
    %110 = vector.broadcast %109 : vector<8x1xf32> to vector<8x32xf32>
    %111 = arith.mulf %106, %110 : vector<8x32xf32>
    %c0_61 = arith.constant 0 : index
    %c0_62 = arith.constant 0 : index
    %112 = vector.load %arg6[%c0_61, %c0_62] : memref<1x32xbf16, #tpu.memory_space<vmem>>, vector<1x32xbf16>
    %113 = arith.extf %112 : vector<1x32xbf16> to vector<1x32xf32>
    %114 = vector.broadcast %113 : vector<1x32xf32> to vector<8x32xf32>
    %115 = arith.mulf %111, %114 : vector<8x32xf32>
    %c0_63 = arith.constant 0 : index
    %c0_64 = arith.constant 0 : index
    %116 = vector.load %arg7[%c0_63, %c0_64] : memref<1x32xbf16, #tpu.memory_space<vmem>>, vector<1x32xbf16>
    %117 = arith.extf %116 : vector<1x32xbf16> to vector<1x32xf32>
    %118 = vector.broadcast %117 : vector<1x32xf32> to vector<8x32xf32>
    %119 = arith.addf %115, %118 : vector<8x32xf32>
    %120 = arith.truncf %119 : vector<8x32xf32> to vector<8x32xbf16>
    %c0_65 = arith.constant 0 : index
    %c0_66 = arith.constant 0 : index
    %c0_67 = arith.constant 0 : index
    %121 = vector.load %arg8[%c0_65, %c0_66, %c0_67] : memref<1x8x32xbf16, #tpu.memory_space<vmem>>, vector<1x8x32xbf16>
    %122 = vector.shape_cast %121 : vector<1x8x32xbf16> to vector<8x32xbf16>
    %123 = vector.shape_cast %120 : vector<8x32xbf16> to vector<1x8x32xbf16>
    tpu.vector_store %arg8[%c0_65, %c0_66, %c0_67], %123 {strides = array<i32>} : memref<1x8x32xbf16, #tpu.memory_space<vmem>>, vector<1x8x32xbf16>,
    return
  }
  func.func @transform_0(%arg0: i32) -> (i32, i32, i32) {
    %c0_i32 = arith.constant 0 : i32
    %c0_i32_0 = arith.constant 0 : i32
    %c0_i32_1 = arith.constant 0 : i32
    return %arg0, %c0_i32, %c0_i32_0 : i32, i32, i32
  }
  func.func @transform_1(%arg0: i32) -> (i32, i32) {
    %c0_i32 = arith.constant 0 : i32
    %c0_i32_0 = arith.constant 0 : i32
    %c0_i32_1 = arith.constant 0 : i32
    return %c0_i32, %c0_i32_0 : i32, i32
  }
  func.func @transform_2(%arg0: i32) -> (i32, i32) {
    %c0_i32 = arith.constant 0 : i32
    %c0_i32_0 = arith.constant 0 : i32
    %c0_i32_1 = arith.constant 0 : i32
    return %c0_i32, %c0_i32_0 : i32, i32
  }
  func.func @transform_3(%arg0: i32) -> (i32, i32) {
    %c0_i32 = arith.constant 0 : i32
    %c0_i32_0 = arith.constant 0 : i32
    %c0_i32_1 = arith.constant 0 : i32
    return %c0_i32, %c0_i32_0 : i32, i32
  }
  func.func @transform_4(%arg0: i32) -> (i32, i32) {
    %c0_i32 = arith.constant 0 : i32
    %c0_i32_0 = arith.constant 0 : i32
    %c0_i32_1 = arith.constant 0 : i32
    return %c0_i32, %c0_i32_0 : i32, i32
  }
  func.func @transform_5(%arg0: i32) -> (i32, i32) {
    %c0_i32 = arith.constant 0 : i32
    %c0_i32_0 = arith.constant 0 : i32
    %c0_i32_1 = arith.constant 0 : i32
    return %c0_i32, %c0_i32_0 : i32, i32
  }
  func.func @transform_6(%arg0: i32) -> (i32, i32) {
    %c0_i32 = arith.constant 0 : i32
    %c0_i32_0 = arith.constant 0 : i32
    %c0_i32_1 = arith.constant 0 : i32
    return %c0_i32, %c0_i32_0 : i32, i32
  }
  func.func @transform_7(%arg0: i32) -> (i32, i32, i32) {
    %c0_i32 = arith.constant 0 : i32
    %c0_i32_0 = arith.constant 0 : i32
    %c0_i32_1 = arith.constant 0 : i32
    return %arg0, %c0_i32, %c0_i32_0 : i32, i32, i32
  }
}

module attributes {stable_mosaic.version = 11 : i64} {
  func.func @_ffn_block_kernel(%arg0: i32, %arg1: memref<16x32xbf16, #tpu.memory_space<vmem>>, %arg2: memref<32x64xbf16, #tpu.memory_space<vmem>>, %arg3: memref<1x64xbf16, #tpu.memory_space<vmem>>, %arg4: memref<64x32xbf16, #tpu.memory_space<vmem>>, %arg5: memref<1x32xbf16, #tpu.memory_space<vmem>>, %arg6: memref<1x32xbf16, #tpu.memory_space<vmem>>, %arg7: memref<1x32xbf16, #tpu.memory_space<vmem>>, %arg8: memref<16x32xbf16, #tpu.memory_space<vmem>>) attributes {dimension_semantics = [#tpu.dimension_semantics<parallel>], iteration_bounds = array<i64: 1>, scalar_prefetch = 0 : i64, scratch_operands = 0 : i64, tpu.core_type = #tpu.core_type<tc>, window_params = [{transform_indices = @transform_0, window_bounds = array<i64: 16, 32>}, {pipeline_mode = #tpu.pipeline_mode<synchronous>, transform_indices = @transform_1, window_bounds = array<i64: 32, 64>}, {pipeline_mode = #tpu.pipeline_mode<synchronous>, transform_indices = @transform_2, window_bounds = array<i64: 1, 64>}, {pipeline_mode = #tpu.pipeline_mode<synchronous>, transform_indices = @transform_3, window_bounds = array<i64: 64, 32>}, {pipeline_mode = #tpu.pipeline_mode<synchronous>, transform_indices = @transform_4, window_bounds = array<i64: 1, 32>}, {pipeline_mode = #tpu.pipeline_mode<synchronous>, transform_indices = @transform_5, window_bounds = array<i64: 1, 32>}, {pipeline_mode = #tpu.pipeline_mode<synchronous>, transform_indices = @transform_6, window_bounds = array<i64: 1, 32>}, {transform_indices = @transform_7, window_bounds = array<i64: 16, 32>}]} {
    %c0 = arith.constant 0 : index
    %c0_0 = arith.constant 0 : index
    %0 = vector.load %arg1[%c0, %c0_0] : memref<16x32xbf16, #tpu.memory_space<vmem>>, vector<16x32xbf16>
    %c0_1 = arith.constant 0 : index
    %c0_2 = arith.constant 0 : index
    %1 = vector.load %arg2[%c0_1, %c0_2] : memref<32x64xbf16, #tpu.memory_space<vmem>>, vector<32x64xbf16>
    %cst = arith.constant dense<0.000000e+00> : vector<16x64xf32>
    %2 = tpu.matmul %0, %1, %cst {dimension_numbers = #tpu.dot_dimension_numbers<[1], [0], [0], [1], [0, 0, 1, 1], [], []>} : vector<16x32xbf16>, vector<32x64xbf16>, vector<16x64xf32> -> vector<16x64xf32>
    %c0_3 = arith.constant 0 : index
    %c0_4 = arith.constant 0 : index
    %3 = vector.load %arg3[%c0_3, %c0_4] : memref<1x64xbf16, #tpu.memory_space<vmem>>, vector<1x64xbf16>
    %4 = arith.extf %3 : vector<1x64xbf16> to vector<1x64xf32>
    %5 = vector.broadcast %4 : vector<1x64xf32> to vector<16x64xf32>
    %6 = arith.addf %2, %5 : vector<16x64xf32>
    %cst_5 = arith.constant 5.000000e-01 : f32
    %7 = vector.broadcast %cst_5 : f32 to vector<16x64xf32>
    %8 = arith.mulf %7, %6 : vector<16x64xf32>
    %cst_6 = arith.constant 4.471500e-02 : f32
    %9 = vector.broadcast %cst_6 : f32 to vector<16x64xf32>
    %10 = arith.mulf %9, %6 : vector<16x64xf32>
    %11 = arith.mulf %10, %6 : vector<16x64xf32>
    %12 = arith.mulf %11, %6 : vector<16x64xf32>
    %13 = arith.addf %6, %12 : vector<16x64xf32>
    %cst_7 = arith.constant 0.797884583 : f32
    %14 = vector.broadcast %cst_7 : f32 to vector<16x64xf32>
    %15 = arith.mulf %14, %13 : vector<16x64xf32>
    %16 = math.tanh %15 : vector<16x64xf32>
    %cst_8 = arith.constant 1.000000e+00 : f32
    %17 = vector.broadcast %cst_8 : f32 to vector<16x64xf32>
    %18 = arith.addf %17, %16 : vector<16x64xf32>
    %19 = arith.mulf %8, %18 : vector<16x64xf32>
    %20 = arith.truncf %19 : vector<16x64xf32> to vector<16x64xbf16>
    %c0_9 = arith.constant 0 : index
    %c0_10 = arith.constant 0 : index
    %21 = vector.load %arg4[%c0_9, %c0_10] : memref<64x32xbf16, #tpu.memory_space<vmem>>, vector<64x32xbf16>
    %cst_11 = arith.constant dense<0.000000e+00> : vector<16x32xf32>
    %22 = tpu.matmul %20, %21, %cst_11 {dimension_numbers = #tpu.dot_dimension_numbers<[1], [0], [0], [1], [0, 0, 1, 1], [], []>} : vector<16x64xbf16>, vector<64x32xbf16>, vector<16x32xf32> -> vector<16x32xf32>
    %c0_12 = arith.constant 0 : index
    %c0_13 = arith.constant 0 : index
    %23 = vector.load %arg5[%c0_12, %c0_13] : memref<1x32xbf16, #tpu.memory_space<vmem>>, vector<1x32xbf16>
    %24 = arith.extf %23 : vector<1x32xbf16> to vector<1x32xf32>
    %25 = vector.broadcast %24 : vector<1x32xf32> to vector<16x32xf32>
    %26 = arith.addf %22, %25 : vector<16x32xf32>
    %27 = arith.extf %0 : vector<16x32xbf16> to vector<16x32xf32>
    %28 = arith.addf %26, %27 : vector<16x32xf32>
    %cst_14 = arith.constant dense<0.000000e+00> : vector<16xf32>
    %29 = vector.multi_reduction <add>, %28, %cst_14 [1] : vector<16x32xf32> to vector<16xf32>
    %30 = vector.shape_cast %29 : vector<16xf32> to vector<16x1xf32>
    %cst_15 = arith.constant 3.200000e+01 : f32
    %31 = vector.broadcast %cst_15 : f32 to vector<16x1xf32>
    %32 = arith.divf %30, %31 : vector<16x1xf32>
    %33 = vector.broadcast %32 : vector<16x1xf32> to vector<16x32xf32>
    %34 = arith.subf %28, %33 : vector<16x32xf32>
    %35 = vector.broadcast %32 : vector<16x1xf32> to vector<16x32xf32>
    %36 = arith.subf %28, %35 : vector<16x32xf32>
    %37 = arith.mulf %34, %36 : vector<16x32xf32>
    %cst_16 = arith.constant dense<0.000000e+00> : vector<16xf32>
    %38 = vector.multi_reduction <add>, %37, %cst_16 [1] : vector<16x32xf32> to vector<16xf32>
    %39 = vector.shape_cast %38 : vector<16xf32> to vector<16x1xf32>
    %cst_17 = arith.constant 3.200000e+01 : f32
    %40 = vector.broadcast %cst_17 : f32 to vector<16x1xf32>
    %41 = arith.divf %39, %40 : vector<16x1xf32>
    %42 = vector.broadcast %32 : vector<16x1xf32> to vector<16x32xf32>
    %43 = arith.subf %28, %42 : vector<16x32xf32>
    %cst_18 = arith.constant 9.99999996E-13 : f32
    %44 = vector.broadcast %cst_18 : f32 to vector<16x1xf32>
    %45 = arith.addf %41, %44 : vector<16x1xf32>
    %46 = math.rsqrt %45 : vector<16x1xf32>
    %47 = vector.broadcast %46 : vector<16x1xf32> to vector<16x32xf32>
    %48 = arith.mulf %43, %47 : vector<16x32xf32>
    %c0_19 = arith.constant 0 : index
    %c0_20 = arith.constant 0 : index
    %49 = vector.load %arg6[%c0_19, %c0_20] : memref<1x32xbf16, #tpu.memory_space<vmem>>, vector<1x32xbf16>
    %50 = arith.extf %49 : vector<1x32xbf16> to vector<1x32xf32>
    %51 = vector.broadcast %50 : vector<1x32xf32> to vector<16x32xf32>
    %52 = arith.mulf %48, %51 : vector<16x32xf32>
    %c0_21 = arith.constant 0 : index
    %c0_22 = arith.constant 0 : index
    %53 = vector.load %arg7[%c0_21, %c0_22] : memref<1x32xbf16, #tpu.memory_space<vmem>>, vector<1x32xbf16>
    %54 = arith.extf %53 : vector<1x32xbf16> to vector<1x32xf32>
    %55 = vector.broadcast %54 : vector<1x32xf32> to vector<16x32xf32>
    %56 = arith.addf %52, %55 : vector<16x32xf32>
    %57 = arith.truncf %56 : vector<16x32xf32> to vector<16x32xbf16>
    %c0_23 = arith.constant 0 : index
    %c0_24 = arith.constant 0 : index
    %58 = vector.load %arg8[%c0_23, %c0_24] : memref<16x32xbf16, #tpu.memory_space<vmem>>, vector<16x32xbf16>
    tpu.vector_store %arg8[%c0_23, %c0_24], %57 {strides = array<i32>} : memref<16x32xbf16, #tpu.memory_space<vmem>>, vector<16x32xbf16>,
    return
  }
  func.func @transform_0(%arg0: i32) -> (i32, i32) {
    %c0_i32 = arith.constant 0 : i32
    %c0_i32_0 = arith.constant 0 : i32
    return %arg0, %c0_i32 : i32, i32
  }
  func.func @transform_1(%arg0: i32) -> (i32, i32) {
    %c0_i32 = arith.constant 0 : i32
    %c0_i32_0 = arith.constant 0 : i32
    %c0_i32_1 = arith.constant 0 : i32
    return %c0_i32, %c0_i32_0 : i32, i32
  }
  func.func @transform_2(%arg0: i32) -> (i32, i32) {
    %c0_i32 = arith.constant 0 : i32
    %c0_i32_0 = arith.constant 0 : i32
    %c0_i32_1 = arith.constant 0 : i32
    return %c0_i32, %c0_i32_0 : i32, i32
  }
  func.func @transform_3(%arg0: i32) -> (i32, i32) {
    %c0_i32 = arith.constant 0 : i32
    %c0_i32_0 = arith.constant 0 : i32
    %c0_i32_1 = arith.constant 0 : i32
    return %c0_i32, %c0_i32_0 : i32, i32
  }
  func.func @transform_4(%arg0: i32) -> (i32, i32) {
    %c0_i32 = arith.constant 0 : i32
    %c0_i32_0 = arith.constant 0 : i32
    %c0_i32_1 = arith.constant 0 : i32
    return %c0_i32, %c0_i32_0 : i32, i32
  }
  func.func @transform_5(%arg0: i32) -> (i32, i32) {
    %c0_i32 = arith.constant 0 : i32
    %c0_i32_0 = arith.constant 0 : i32
    %c0_i32_1 = arith.constant 0 : i32
    return %c0_i32, %c0_i32_0 : i32, i32
  }
  func.func @transform_6(%arg0: i32) -> (i32, i32) {
    %c0_i32 = arith.constant 0 : i32
    %c0_i32_0 = arith.constant 0 : i32
    %c0_i32_1 = arith.constant 0 : i32
    return %c0_i32, %c0_i32_0 : i32, i32
  }
  func.func @transform_7(%arg0: i32) -> (i32, i32) {
    %c0_i32 = arith.constant 0 : i32
    %c0_i32_0 = arith.constant 0 : i32
    return %arg0, %c0_i32 : i32, i32
  }
}

module attributes {stable_mosaic.version = 11 : i64} {
  func.func @_head_kernel(%arg0: i32, %arg1: memref<2x32xbf16, #tpu.memory_space<vmem>>, %arg2: memref<32x32xbf16, #tpu.memory_space<vmem>>, %arg3: memref<1x32xbf16, #tpu.memory_space<vmem>>, %arg4: memref<32x128xbf16, #tpu.memory_space<vmem>>, %arg5: memref<1x128xbf16, #tpu.memory_space<vmem>>, %arg6: memref<2x128xf32, #tpu.memory_space<vmem>>) attributes {dimension_semantics = [#tpu.dimension_semantics<arbitrary>], iteration_bounds = array<i64: 1>, scalar_prefetch = 0 : i64, scratch_operands = 0 : i64, tpu.core_type = #tpu.core_type<tc>, window_params = [{pipeline_mode = #tpu.pipeline_mode<synchronous>, transform_indices = @transform_0, window_bounds = array<i64: 2, 32>}, {pipeline_mode = #tpu.pipeline_mode<synchronous>, transform_indices = @transform_1, window_bounds = array<i64: 32, 32>}, {pipeline_mode = #tpu.pipeline_mode<synchronous>, transform_indices = @transform_2, window_bounds = array<i64: 1, 32>}, {pipeline_mode = #tpu.pipeline_mode<synchronous>, transform_indices = @transform_3, window_bounds = array<i64: 32, 128>}, {pipeline_mode = #tpu.pipeline_mode<synchronous>, transform_indices = @transform_4, window_bounds = array<i64: 1, 128>}, {pipeline_mode = #tpu.pipeline_mode<synchronous>, transform_indices = @transform_5, window_bounds = array<i64: 2, 128>}]} {
    %c0 = arith.constant 0 : index
    %c0_0 = arith.constant 0 : index
    %0 = vector.load %arg1[%c0, %c0_0] : memref<2x32xbf16, #tpu.memory_space<vmem>>, vector<2x32xbf16>
    %c0_1 = arith.constant 0 : index
    %c0_2 = arith.constant 0 : index
    %1 = vector.load %arg2[%c0_1, %c0_2] : memref<32x32xbf16, #tpu.memory_space<vmem>>, vector<32x32xbf16>
    %cst = arith.constant dense<0.000000e+00> : vector<2x32xf32>
    %2 = tpu.matmul %0, %1, %cst {dimension_numbers = #tpu.dot_dimension_numbers<[1], [0], [0], [1], [0, 0, 1, 1], [], []>} : vector<2x32xbf16>, vector<32x32xbf16>, vector<2x32xf32> -> vector<2x32xf32>
    %c0_3 = arith.constant 0 : index
    %c0_4 = arith.constant 0 : index
    %3 = vector.load %arg3[%c0_3, %c0_4] : memref<1x32xbf16, #tpu.memory_space<vmem>>, vector<1x32xbf16>
    %4 = arith.extf %3 : vector<1x32xbf16> to vector<1x32xf32>
    %5 = vector.broadcast %4 : vector<1x32xf32> to vector<2x32xf32>
    %6 = arith.addf %2, %5 : vector<2x32xf32>
    %7 = math.tanh %6 : vector<2x32xf32>
    %8 = arith.truncf %7 : vector<2x32xf32> to vector<2x32xbf16>
    %c0_5 = arith.constant 0 : index
    %c0_6 = arith.constant 0 : index
    %9 = vector.load %arg4[%c0_5, %c0_6] : memref<32x128xbf16, #tpu.memory_space<vmem>>, vector<32x128xbf16>
    %cst_7 = arith.constant dense<0.000000e+00> : vector<2x128xf32>
    %10 = tpu.matmul %8, %9, %cst_7 {dimension_numbers = #tpu.dot_dimension_numbers<[1], [0], [0], [1], [0, 0, 1, 1], [], []>} : vector<2x32xbf16>, vector<32x128xbf16>, vector<2x128xf32> -> vector<2x128xf32>
    %c0_8 = arith.constant 0 : index
    %c0_9 = arith.constant 0 : index
    %11 = vector.load %arg5[%c0_8, %c0_9] : memref<1x128xbf16, #tpu.memory_space<vmem>>, vector<1x128xbf16>
    %12 = arith.extf %11 : vector<1x128xbf16> to vector<1x128xf32>
    %13 = vector.broadcast %12 : vector<1x128xf32> to vector<2x128xf32>
    %14 = arith.addf %10, %13 : vector<2x128xf32>
    %c0_10 = arith.constant 0 : index
    %c0_11 = arith.constant 0 : index
    %15 = vector.load %arg6[%c0_10, %c0_11] : memref<2x128xf32, #tpu.memory_space<vmem>>, vector<2x128xf32>
    tpu.vector_store %arg6[%c0_10, %c0_11], %14 {strides = array<i32>} : memref<2x128xf32, #tpu.memory_space<vmem>>, vector<2x128xf32>,
    return
  }
  func.func @transform_0(%arg0: i32) -> (i32, i32) {
    %c0_i32 = arith.constant 0 : i32
    %c0_i32_0 = arith.constant 0 : i32
    %c0_i32_1 = arith.constant 0 : i32
    return %c0_i32, %c0_i32_0 : i32, i32
  }
  func.func @transform_1(%arg0: i32) -> (i32, i32) {
    %c0_i32 = arith.constant 0 : i32
    %c0_i32_0 = arith.constant 0 : i32
    %c0_i32_1 = arith.constant 0 : i32
    return %c0_i32, %c0_i32_0 : i32, i32
  }
  func.func @transform_2(%arg0: i32) -> (i32, i32) {
    %c0_i32 = arith.constant 0 : i32
    %c0_i32_0 = arith.constant 0 : i32
    %c0_i32_1 = arith.constant 0 : i32
    return %c0_i32, %c0_i32_0 : i32, i32
  }
  func.func @transform_3(%arg0: i32) -> (i32, i32) {
    %c0_i32 = arith.constant 0 : i32
    %c0_i32_0 = arith.constant 0 : i32
    %c0_i32_1 = arith.constant 0 : i32
    return %c0_i32, %c0_i32_0 : i32, i32
  }
  func.func @transform_4(%arg0: i32) -> (i32, i32) {
    %c0_i32 = arith.constant 0 : i32
    %c0_i32_0 = arith.constant 0 : i32
    %c0_i32_1 = arith.constant 0 : i32
    return %c0_i32, %c0_i32_0 : i32, i32
  }
  func.func @transform_5(%arg0: i32) -> (i32, i32) {
    %c0_i32 = arith.constant 0 : i32
    %c0_i32_0 = arith.constant 0 : i32
    %c0_i32_1 = arith.constant 0 : i32
    return %c0_i32, %c0_i32_0 : i32, i32
  }
}

</mosaic_0001>

<bundles_post_ra>
// kernel: pure_bert_forward.6
= control target key start
LH: loop header
LB: loop body
LE: loop exit
PB: predicated region body
PF: predicated region fallthrough
CT: control target
= control target key end

     0   :  { %vm18_vm0 = vcmask 261120   ;;  %v100_v5 = vmov 32.0   ;;  %vm82_vm6 = vcmask 257024   ;;  %s140_s0 = inlined_call_operand.vmem [shape: bf16[16,32], index: 0, kind: input, shape index: {}]   ;;  %s141_s1 = inlined_call_operand.vmem [shape: bf16[1,32], index: 1, kind: input, shape index: {}]   ;;  %s142_s2 = inlined_call_operand.vmem [shape: bf16[1,32], index: 2, kind: input, shape index: {}]   ;;  %s143_s3 = inlined_call_operand.vmem [shape: bf16[16,32], index: 3, kind: output, shape index: {}]  }
   0x1   :  { %v90_v0 = vld [vmem:[%s140_s0] sm:$0xff]   ;;  %94 = vrcp.f32 %v100_v5 }
   0x2   :  { %v91_v1 = vunpack.c.l.bf16 %v90_v0  ;;  %v92_v3 = vunpack.c.h.bf16 %v90_v0  ;;  %v70_v30 = vld [vmem:[%s141_s1] sm:$0x1] }
   0x3   :  { %v75_v32 = vld [vmem:[%s142_s2] sm:$0x1]  ;;  %v71_v34 = vunpack.c.l.bf16 %v70_v30 }
   0x4   :  { %v19_v2 = vsel %vm18_vm0, %v91_v1, 0.0  ;;  %v22_v4 = vsel %vm18_vm0, %v92_v3, 0.0  ;;  %v76_v37 = vunpack.c.l.bf16 %v75_v32 }
   0x5   :  { %20 = vadd.xlane.f32.xlu0 %v19_v2  ;;  %v72_v40 = vperm.slane %v71_v34, 0 }
   0x6   :  { %v77_v43 = vperm.slane %v76_v37, 0 }
   0x7   :  { %v95_v6 = vpop.eup %94 }
   0x8   :  { %v26_v7 = vmul.f32 32.0, %v95_v6  ;;  %vm30_vm1 = vweird.f32 %v95_v6 }
   0xa   :  { %v27_v8 = vsub.f32 1.0, %v26_v7 }
   0xc   :  { %v28_v9 = vmul.f32 %v95_v6, %v27_v8 }
   0xd   :  { %23 = vadd.xlane.f32.xlu0 %v22_v4 }
   0xe   :  { %v29_v10 = vadd.f32 %v95_v6, %v28_v9 }
  0x10   :  { %v31_v11 = vsel %vm30_vm1, %v95_v6, %v29_v10 }
  0x78   :  { %v21_v12 = vpop.xlane.xlu0 %20 }
  0x79   :  { %v32_v13 = vmul.f32 %v31_v11, %v21_v12 }
  0x7b   :  { %v34_v14 = vsub.f32 %v91_v1, %v32_v13 }
  0x7d   :  { %v36_v15 = vmul.f32 %v34_v14, %v34_v14 }
  0x7f   :  { %v38_v16 = vsel %vm18_vm0, %v36_v15, 0.0 }
  0x80   :  { %39 = vadd.xlane.f32.xlu1 %v38_v16  ;;  %v24_v17 = vpop.xlane.xlu0 %23 }
  0x81   :  { %v33_v18 = vmul.f32 %v31_v11, %v24_v17 }
  0x83   :  { %v35_v19 = vsub.f32 %v92_v3, %v33_v18 }
  0x85   :  { %v37_v20 = vmul.f32 %v35_v19, %v35_v19 }
  0x87   :  { %v41_v21 = vsel %vm18_vm0, %v37_v20, 0.0 }
  0x88   :  { %42 = vadd.xlane.f32.xlu1 %v41_v21 }
  0xf3   :  { %v40_v22 = vpop.xlane.xlu1 %39 }
  0xf4   :  { %v44_v23 = vmul.f32 %v40_v22, %v31_v11 }
  0xf6   :  { %v46_v24 = vadd.f32 1e-12, %v44_v23 }
  0xf8   :  { %96 = vrsqrt.f32 %v46_v24  ;;  %vm54_vm3 = vweird.f32 %v46_v24 }
  0xfb   :  { %v43_v25 = vpop.xlane.xlu1 %42 }
  0xfc   :  { %v45_v26 = vmul.f32 %v43_v25, %v31_v11 }
  0xfe   :  { %v97_v27 = vpop.eup %96  ;;  %v47_v28 = vadd.f32 1e-12, %v45_v26 }
  0xff   :  { %v49_v29 = vmul.f32 %v97_v27, %v46_v24  ;;  %vm55_vm2 = vweird.f32 %v97_v27 }
 0x100   :  { %98 = vrsqrt.f32 %v47_v28  ;;  %vm56_vm4 = vmor %vm54_vm3, %vm55_vm2  ;;  %vm64_vm7 = vweird.f32 %v47_v28 }
 0x101   :  { %v50_v31 = vmul.f32 %v97_v27, %v49_v29 }
 0x103   :  { %v51_v33 = vmul.f32 0.5, %v50_v31 }
 0x105   :  { %v52_v35 = vsub.f32 1.5, %v51_v33 }
 0x106   :  { %v99_v36 = vpop.eup %98 }
 0x107   :  { %v53_v38 = vmul.f32 %v97_v27, %v52_v35  ;;  %v59_v39 = vmul.f32 %v99_v36, %v47_v28  ;;  %vm65_vm5 = vweird.f32 %v99_v36 }
 0x108   :  { %vm66_vm8 = vmor %vm64_vm7, %vm65_vm5 }
 0x109   :  { %v57_v41 = vsel %vm56_vm4, %v97_v27, %v53_v38  ;;  %v60_v42 = vmul.f32 %v99_v36, %v59_v39 }
 0x10a   :  { %v68_v44 = vmul.f32 %v57_v41, %v34_v14 }
 0x10b   :  { %v61_v45 = vmul.f32 0.5, %v60_v42 }
 0x10c   :  { %v73_v46 = vmul.f32 %v72_v40, %v68_v44 }
 0x10d   :  { %v62_v47 = vsub.f32 1.5, %v61_v45 }
 0x10e   :  { %v78_v48 = vadd.f32 %v77_v43, %v73_v46 }
 0x10f   :  { %v63_v49 = vmul.f32 %v99_v36, %v62_v47 }
 0x110   :  { %v80_v50 = vpack.c.bf16 %v78_v48, %v78_v48 }
 0x111   :  { %v67_v51 = vsel %vm66_vm8, %v99_v36, %v63_v49 }
 0x112   :  { %83 = vst.msk [vmem:[%s143_s3] sm:$0xf] %vm82_vm6, %v80_v50  ;;  %v69_v52 = vmul.f32 %v67_v51, %v35_v19 }
 0x114   :  { %v74_v53 = vmul.f32 %v72_v40, %v69_v52 }
 0x116   :  { %v79_v54 = vadd.f32 %v77_v43, %v74_v53 }
 0x118   :  { %v81_v55 = vpack.c.bf16 %v79_v54, %v79_v54 }
 0x11a   :  { %84 = vst.msk [vmem:[%s143_s3 + $0x4] sm:$0xf] %vm82_vm6, %v81_v55 }

// kernel: pure_bert_forward.11
= control target key start
LH: loop header
LB: loop body
LE: loop exit
PB: predicated region body
PF: predicated region fallthrough
CT: control target
= control target key end

     0   :  { %s219_s0 = inlined_call_operand.vmem [shape: bf16[2,32], index: 0, kind: input, shape index: {}]   ;;  %s220_s1 = inlined_call_operand.vmem [shape: bf16[32,32], index: 1, kind: input, shape index: {}]   ;;  %s221_s2 = inlined_call_operand.vmem [shape: bf16[1,32], index: 2, kind: input, shape index: {}]   ;;  %s222_s3 = inlined_call_operand.vmem [shape: bf16[32,128], index: 3, kind: input, shape index: {}]   ;;  %s223_s4 = inlined_call_operand.vmem [shape: bf16[1,128], index: 4, kind: input, shape index: {}]   ;;  %s224_s5 = inlined_call_operand.hbm [shape: f32[2,128], index: 5, kind: output, shape index: {}]  }
   0x1   :  { %v132_v0 = vld [vmem:[%s220_s1 + $0x8] sm:$0xff] }
   0x2   :  { %10 = vsyncpa [#allocation3], 0  ;;  %52 = vmatpush.bf16.msra.mxu0 %v132_v0  ;;  %v131_v1 = vld [vmem:[%s220_s1] sm:$0xff]  ;;  %vm42_vm0 = vcmask 261120   ;;  %v134_v3 = vld [vmem:[%s222_s3 + $0x8] sm:$0xff] }
   0x3   :  { %v22_v2 = vld [vmem:[%s219_s0] sm:$0x1]  ;;  %89 = vmatpush.bf16.msra.mxu1 %v134_v3 }
   0x4   :  { %v133_v4 = vld [vmem:[%s222_s3] sm:$0xff]  ;;  %s164_s3 = smov [#allocation2]  }
   0x5   :  { %v27_v5 = vld [vmem:[%s221_s2] sm:$0x1]  ;;  %s102_s30 = sshll.u32 %s164_s3, 4  ;;  %s104_s2 = sshll.u32 %s224_s5, 4  ;;  %s103_s30 = int_to_ptr.vmem [resolvable:$true] %s102_s30  ;;  %s105_s2 = int_to_ptr.hbm [resolvable:$true] %s104_s2 }
   0x6   :  { %53 = vmatpush.bf16.msra.mxu0 %v131_v1  ;;  %v28_v6 = vunpack.c.l.bf16 %v27_v5  ;;  %v65_v13 = vld [vmem:[%s223_s4] sm:$0x1] }
   0x7   :  { %90 = vmatpush.bf16.msra.mxu1 %v133_v4  ;;  %v66_v14 = vunpack.c.l.bf16 %v65_v13 }
   0x8   :  { %v29_v7 = vperm.slane %v28_v6, 0 }
   0x9   :  { %121 = vmatmul.msk.bf16.vlgmr.msra.gmra.mxu0 %vm42_vm0, %v22_v2  ;;  %v67_v15 = vperm.slane %v66_v14, 0 }
  0x86   :  { %v55_v8 = vpop.f32.mrf.mxu0 }
  0x87   :  { %v56_v9 = vadd.f32 %v55_v8, %v29_v7 }
  0x89   :  { %136 = vtanh.f32 %v56_v9 }
  0x8e   :  { %v57_v10 = vpop.f32.mrf.mxu0 }
  0x8f   :  { %v137_v11 = vpop.eup %136 }
  0x90   :  { %v60_v12 = vpack.c.bf16 %v137_v11, %v137_v11 }
  0x92   :  { %130 = vmatmul.msk.bf16.vlgmr.msra.gmra.mxu1 %vm42_vm0, %v60_v12 }
 0x10f   :  { %v92_v16 = vpop.f32.mrf.mxu1 }
 0x110   :  { %v93_v17 = vadd.f32 %v92_v16, %v67_v15 }
 0x112   :  { %96 = vst [vmem:[#allocation2] sm:$0x3] %v93_v17 }
 0x113   :  { %107 = dma.vmem_to_hbm [thread:$0]  %s103_s30, 32, %s105_s2, [#allocation3]  }
 0x117   :  { %v94_v18 = vpop.f32.mrf.mxu1 }
 0x118   :  { %162 = dma.done.wait [#allocation3], 32  }
 0x119   :  { %163 = vsyncadd [#allocation3], 4294967264 }
 0x11a   :  { %112 = vsyncpa [#allocation3], 1 }

// kernel: pure_bert_forward.8
= control target key start
LH: loop header
LB: loop body
LE: loop exit
PB: predicated region body
PF: predicated region fallthrough
CT: control target
= control target key end

     0   :  { %vm53_vm0 = vcmask 261120   ;;  %vm125_vm1 = vcmask 523264   ;;  %v265_v47 = vmov 32.0   ;;  %vm210_vm7 = vcmask 257024   ;;  %s353_s1 = inlined_call_operand.vmem [shape: bf16[32,64], index: 1, kind: input, shape index: {}]   ;;  %s354_s0 = inlined_call_operand.vmem [shape: bf16[16,32], index: 0, kind: input, shape index: {}]   ;;  %s355_s3 = inlined_call_operand.vmem [shape: bf16[64,32], index: 3, kind: input, shape index: {}]   ;;  %s356_s2 = inlined_call_operand.vmem [shape: bf16[1,64], index: 2, kind: input, shape index: {}]   ;;  %s357_s4 = inlined_call_operand.vmem [shape: bf16[1,32], index: 4, kind: input, shape index: {}]   ;;  %s358_s5 = inlined_call_operand.vmem [shape: bf16[1,32], index: 5, kind: input, shape index: {}]   ;;  %s359_s6 = inlined_call_operand.vmem [shape: bf16[1,32], index: 6, kind: input, shape index: {}]   ;;  %s360_s7 = inlined_call_operand.vmem [shape: bf16[16,32], index: 7, kind: output, shape index: {}]  }
   0x1   :  { %v249_v0 = vld [vmem:[%s353_s1 + $0x8] sm:$0xff]  ;;  %v248_v1 = vld [vmem:[%s353_s1] sm:$0xff]  ;;  %v253_v3 = vld [vmem:[%s355_s3 + $0x18] sm:$0xff] }
   0x2   :  { %63 = vmatpush.bf16.msra.mxu0 %v249_v0  ;;  %v247_v2 = vld [vmem:[%s354_s0] sm:$0xff]  ;;  %133 = vmatpush.bf16.msra.mxu1 %v253_v3  ;;  %v252_v4 = vld [vmem:[%s355_s3 + $0x10] sm:$0xff]  ;;  %v251_v5 = vld [vmem:[%s355_s3 + $0x8] sm:$0xff] }
   0x3   :  { %v33_v6 = vld [vmem:[%s356_s2] sm:$0x1] }
   0x4   :  { %v250_v7 = vld [vmem:[%s355_s3] sm:$0xff]  ;;  %v34_v8 = vunpack.c.l.bf16 %v33_v6 }
   0x5   :  { %v98_v33 = vld [vmem:[%s357_s4] sm:$0x1] }
   0x6   :  { %64 = vmatpush.bf16.msra.mxu0 %v248_v1  ;;  %134 = vmatpush.bf16.msra.mxu1 %v252_v4  ;;  %v35_v9 = vperm.slane %v34_v8, 0  ;;  %v99_v34 = vunpack.c.l.bf16 %v98_v33  ;;  %v27_v35 = vld [vmem:[%s354_s0] sm:$0xff]  }
   0x7   :  { %v143_v37 = vunpack.c.l.bf16 %v27_v35  ;;  %v144_v42 = vunpack.c.h.bf16 %v27_v35  ;;  %v198_v8 = vld [vmem:[%s358_s5] sm:$0x1] }
   0x8   :  { %v100_v36 = vperm.slane %v99_v34, 0 }
   0x9   :  { %229 = vmatmul.msk.bf16.vlgmr.msra.gmra.mxu0 %vm53_vm0, %v247_v2 }
   0xa   :  { %135 = vmatpush.bf16.msra.mxu1 %v251_v5 }
   0xe   :  { %136 = vmatpush.bf16.msra.mxu1 %v250_v7 }
  0x86   :  { %v66_v10 = vpop.f32.mrf.mxu0 }
  0x87   :  { %v67_v11 = vadd.f32 %v66_v10, %v35_v9  ;;  %v203_v10 = vld [vmem:[%s359_s6] sm:$0x1] }
  0x89   :  { %v73_v12 = vmul.f32 0.044715, %v67_v11  ;;  %v71_v27 = vmul.f32 0.5, %v67_v11 }
  0x8b   :  { %v75_v13 = vmul.f32 %v73_v12, %v67_v11  ;;  %v199_v12 = vunpack.c.l.bf16 %v198_v8 }
  0x8d   :  { %v77_v14 = vmul.f32 %v75_v13, %v67_v11 }
  0x8e   :  { %v68_v15 = vpop.f32.mrf.mxu0 }
  0x8f   :  { %v69_v16 = vadd.f32 %v68_v15, %v35_v9  ;;  %v79_v17 = vadd.f32 %v77_v14, %v67_v11  ;;  %v204_v15 = vunpack.c.l.bf16 %v203_v10 }
  0x91   :  { %v74_v18 = vmul.f32 0.044715, %v69_v16  ;;  %v81_v20 = vmul.f32 0.7978846, %v79_v17  ;;  %v72_v28 = vmul.f32 0.5, %v69_v16 }
  0x93   :  { %v76_v19 = vmul.f32 %v74_v18, %v69_v16  ;;  %255 = vtanh.f32 %v81_v20  ;;  %v200_v18 = vperm.slane %v199_v12, 0 }
  0x95   :  { %v78_v21 = vmul.f32 %v76_v19, %v69_v16 }
  0x97   :  { %v80_v22 = vadd.f32 %v78_v21, %v69_v16  ;;  %v205_v21 = vperm.slane %v204_v15, 0 }
  0x99   :  { %v82_v23 = vmul.f32 0.7978846, %v80_v22  ;;  %v256_v24 = vpop.eup %255 }
  0x9a   :  { %v85_v25 = vadd.f32 1.0, %v256_v24 }
  0x9b   :  { %257 = vtanh.f32 %v82_v23 }
  0x9c   :  { %v87_v30 = vmul.f32 %v85_v25, %v71_v27  ;;  %259 = vrcp.f32 %v265_v47 }
  0xa1   :  { %v258_v26 = vpop.eup %257 }
  0xa2   :  { %v86_v29 = vadd.f32 1.0, %v258_v26  ;;  %v260_v48 = vpop.eup %259 }
  0xa3   :  { %v154_v49 = vmul.f32 32.0, %v260_v48  ;;  %vm158_vm2 = vweird.f32 %v260_v48 }
  0xa4   :  { %v88_v31 = vmul.f32 %v86_v29, %v72_v28 }
  0xa5   :  { %v155_v50 = vsub.f32 1.0, %v154_v49 }
  0xa6   :  { %v89_v32 = vpack.c.bf16 %v88_v31, %v87_v30 }
  0xa7   :  { %v156_v51 = vmul.f32 %v260_v48, %v155_v50 }
  0xa8   :  { %246 = vmatmul.msk.bf16.vlgmr.msra.gmra.mxu1 %vm125_vm1, %v89_v32 }
  0xa9   :  { %v157_v52 = vadd.f32 %v260_v48, %v156_v51 }
  0xab   :  { %v159_v53 = vsel %vm158_vm2, %v260_v48, %v157_v52 }
 0x125   :  { %v138_v38 = vpop.f32.mrf.mxu1 }
 0x126   :  { %v139_v39 = vadd.f32 %v138_v38, %v100_v36 }
 0x128   :  { %v145_v40 = vadd.f32 %v143_v37, %v139_v39 }
 0x12a   :  { %v147_v41 = vsel %vm53_vm0, %v145_v40, 0.0 }
 0x12b   :  { %148 = vadd.xlane.f32.xlu0 %v147_v41 }
 0x12d   :  { %v140_v43 = vpop.f32.mrf.mxu1 }
 0x12e   :  { %v141_v44 = vadd.f32 %v140_v43, %v100_v36 }
 0x130   :  { %v146_v45 = vadd.f32 %v144_v42, %v141_v44 }
 0x132   :  { %v150_v46 = vsel %vm53_vm0, %v146_v45, 0.0 }
 0x133   :  { %151 = vadd.xlane.f32.xlu0 %v150_v46 }
 0x19e   :  { %v149_v54 = vpop.xlane.xlu0 %148 }
 0x19f   :  { %v160_v55 = vmul.f32 %v159_v53, %v149_v54 }
 0x1a1   :  { %v162_v56 = vsub.f32 %v145_v40, %v160_v55 }
 0x1a3   :  { %v164_v57 = vmul.f32 %v162_v56, %v162_v56 }
 0x1a5   :  { %v166_v58 = vsel %vm53_vm0, %v164_v57, 0.0 }
 0x1a6   :  { %167 = vadd.xlane.f32.xlu1 %v166_v58  ;;  %v152_v59 = vpop.xlane.xlu0 %151 }
 0x1a7   :  { %v161_v60 = vmul.f32 %v159_v53, %v152_v59 }
 0x1a9   :  { %v163_v61 = vsub.f32 %v146_v45, %v161_v60 }
 0x1ab   :  { %v165_v62 = vmul.f32 %v163_v61, %v163_v61 }
 0x1ad   :  { %v169_v63 = vsel %vm53_vm0, %v165_v62, 0.0 }
 0x1ae   :  { %170 = vadd.xlane.f32.xlu1 %v169_v63 }
 0x219   :  { %v168_v0 = vpop.xlane.xlu1 %167 }
 0x21a   :  { %v172_v1 = vmul.f32 %v168_v0, %v159_v53 }
 0x21c   :  { %v174_v2 = vadd.f32 1e-12, %v172_v1 }
 0x21e   :  { %261 = vrsqrt.f32 %v174_v2  ;;  %vm182_vm4 = vweird.f32 %v174_v2 }
 0x221   :  { %v171_v3 = vpop.xlane.xlu1 %170 }
 0x222   :  { %v173_v4 = vmul.f32 %v171_v3, %v159_v53 }
 0x224   :  { %v262_v5 = vpop.eup %261  ;;  %v175_v6 = vadd.f32 1e-12, %v173_v4 }
 0x225   :  { %v177_v7 = vmul.f32 %v262_v5, %v174_v2  ;;  %vm183_vm3 = vweird.f32 %v262_v5 }
 0x226   :  { %263 = vrsqrt.f32 %v175_v6  ;;  %vm184_vm5 = vmor %vm182_vm4, %vm183_vm3  ;;  %vm192_vm8 = vweird.f32 %v175_v6 }
 0x227   :  { %v178_v9 = vmul.f32 %v262_v5, %v177_v7 }
 0x229   :  { %v179_v11 = vmul.f32 0.5, %v178_v9 }
 0x22b   :  { %v180_v13 = vsub.f32 1.5, %v179_v11 }
 0x22c   :  { %v264_v14 = vpop.eup %263 }
 0x22d   :  { %v181_v16 = vmul.f32 %v262_v5, %v180_v13  ;;  %v187_v17 = vmul.f32 %v264_v14, %v175_v6  ;;  %vm193_vm6 = vweird.f32 %v264_v14 }
 0x22e   :  { %vm194_vm9 = vmor %vm192_vm8, %vm193_vm6 }
 0x22f   :  { %v185_v19 = vsel %vm184_vm5, %v262_v5, %v181_v16  ;;  %v188_v20 = vmul.f32 %v264_v14, %v187_v17 }
 0x230   :  { %v196_v22 = vmul.f32 %v185_v19, %v162_v56 }
 0x231   :  { %v189_v23 = vmul.f32 0.5, %v188_v20 }
 0x232   :  { %v201_v24 = vmul.f32 %v200_v18, %v196_v22 }
 0x233   :  { %v190_v25 = vsub.f32 1.5, %v189_v23 }
 0x234   :  { %v206_v26 = vadd.f32 %v205_v21, %v201_v24 }
 0x235   :  { %v191_v27 = vmul.f32 %v264_v14, %v190_v25 }
 0x236   :  { %v208_v28 = vpack.c.bf16 %v206_v26, %v206_v26 }
 0x237   :  { %v195_v29 = vsel %vm194_vm9, %v264_v14, %v191_v27 }
 0x238   :  { %211 = vst.msk [vmem:[%s360_s7] sm:$0xf] %vm210_vm7, %v208_v28  ;;  %v197_v30 = vmul.f32 %v195_v29, %v163_v61 }
 0x23a   :  { %v202_v31 = vmul.f32 %v200_v18, %v197_v30 }
 0x23c   :  { %v207_v32 = vadd.f32 %v205_v21, %v202_v31 }
 0x23e   :  { %v209_v33 = vpack.c.bf16 %v207_v32, %v207_v32 }
 0x240   :  { %212 = vst.msk [vmem:[%s360_s7 + $0x4] sm:$0xf] %vm210_vm7, %v209_v33 }

// kernel: pure_bert_forward.7
= control target key start
LH: loop header
LB: loop body
LE: loop exit
PB: predicated region body
PF: predicated region fallthrough
CT: control target
= control target key end

     0   :  { %s907_s24 = smov 0   ;;  %s1010_s0 = inlined_call_operand.vmem [shape: bf16[2,8,32], index: 0, kind: input, shape index: {}]   ;;  %s1011_s1 = inlined_call_operand.vmem [shape: bf16[32,96], index: 1, kind: input, shape index: {}]   ;;  %s1012_s2 = inlined_call_operand.vmem [shape: bf16[1,96], index: 2, kind: input, shape index: {}]   ;;  %s1013_s3 = inlined_call_operand.vmem [shape: bf16[32,32], index: 3, kind: input, shape index: {}]   ;;  %s1014_s4 = inlined_call_operand.vmem [shape: bf16[1,32], index: 4, kind: input, shape index: {}]   ;;  %s1015_s5 = inlined_call_operand.vmem [shape: bf16[1,32], index: 5, kind: input, shape index: {}]   ;;  %s1016_s6 = inlined_call_operand.vmem [shape: bf16[1,32], index: 6, kind: input, shape index: {}]   ;;  %s1017_s7 = inlined_call_operand.vmem [shape: bf16[2,8,32], index: 7, kind: output, shape index: {}]  }
   0x1 LB: > { %s762_s25 = sadd.s32 4294967295, %s850_s24   ;;  %p766_p0 = scmp.ge.s32.totalorder %s850_s24, 1  ;;  %s850_s24 = sphi %s907_s24, %s17_s24  }
   0x2   : > { %p236_p1 = scmp.lt.s32.totalorder %s850_s24, 3 }
   0x4   : > { %p237_p2 = pnand %p766_p0, %p236_p1 }
   0x5   : > { %p266_p3 = scmp.lt.s32.totalorder (!%p237_p2), %s762_s25, 1  ;;  %s852_s13 = smov (!%p237_p2), 104  }
   0x6   : > { %240 = sbr.rel (%p237_p2) target bundleno = 1375 (0x55f), region = 48  ;;  %s853_s14 = smov (!%p237_p2), 120  }
   0x7   : > { %s854_s15 = smov (!%p237_p2), 96   ;;  %s855_s16 = smov (!%p237_p2), 80  }
   0x8   : > { %s856_s17 = smov (!%p237_p2), 72   ;;  %s857_s18 = smov (!%p237_p2), 88  }
   0x9   : > { %s858_s19 = smov (!%p237_p2), 112   ;;  %s859_s20 = smov (!%p237_p2), 64  }
   0xa   : > { %s860_s21 = smov (!%p237_p2), 48   ;;  %s861_s22 = smov (!%p237_p2), 56  }
   0xb   : > { %v798_v0 = vld [vmem:[%s1011_s1 + $0x8] sm:$0xff]  ;;  %v797_v1 = vld [vmem:[%s1011_s1] sm:$0xff]  ;;  %s1019_s25 = smov (!%p266_p3, %s762_s25), 1  ;;  %vm295_vm0 = vcmask 261120   ;;  %vm313_vm1 = vcmask 781312   ;;  %vm321_vm2 = vcmask 64512  }
   0xc   : > { %305 = vmatpush.bf16.msra.mxu0 %v798_v0  ;;  %s767_s30 = sshll.u32 %s1019_s25, 2  ;;  %v280_v3 = vld [vmem:[%s1012_s2] sm:$0x1]  ;;  %vm372_vm3 = vcmask 1043456   ;;  %s862_s23 = smov 40  }
   0xd   : > { %s269_s10 = scalar_lea.vmem %s1010_s0, %s767_s30  ;;  %v281_v4 = vunpack.c.l.bf16 %v280_v3  ;;  %s863_s26 = smov 8  }
   0xe   : > { %v929_v2 = vld [vmem:[%s269_s10] sm:$0xf]  ;;  %s864_s27 = smov 16   ;;  %s865_s28 = smov 24  }
   0xf   : > { %v282_v5 = vperm.slane %v281_v4, 0 }
  0x10   : > { %306 = vmatpush.bf16.msra.mxu0 %v797_v1 }
  0x13   : > { %777 = vmatmul.msk.bf16.vlgmr.msra.gmra.mxu0 %vm295_vm0, %v929_v2 }
  0x90   : > { %v308_v6 = vpop.f32.mrf.mxu0 }
  0x91   : > { %v309_v7 = vadd.f32 %v308_v6, %v282_v5 }
  0x93   : > { %v312_v8 = vpack.c.bf16 %v309_v7, %v309_v7 }
  0x95   : > { %314 = vst.msk [vmem:[#allocation2] sm:$0xf] %vm313_vm1, %v312_v8 }
  0x98   : > { %v310_v9 = vpop.f32.mrf.mxu0 }
  0x9c   : > { %v550_v10 = vld [vmem:[#allocation2] sm:$0xf] }
  0x9d   : > { %v390_v11 = vld [vmem:[#allocation2] sm:$0xf]  ;;  %v552_v13 = vunpack.c.l.b16 %v550_v10 }
  0x9e   : > { %v315_v12 = vld [vmem:[#allocation2] sm:$0xf]  ;;  %v392_v14 = vunpack.c.l.b16 %v390_v11 }
  0x9f   : > { %v317_v15 = vunpack.c.l.b16 %v315_v12  ;;  %v936_v16 = vpack.c.b16 %v552_v13, %v552_v13  ;;  %v470_v19 = vld [vmem:[#allocation2] sm:$0xf] }
  0xa0   : > { %v938_v17 = vpack.c.b16 %v392_v14, %v392_v14  ;;  %v472_v20 = vunpack.c.l.b16 %v470_v19 }
  0xa1   : > { %v318_v18 = vpack.c.b16 %v317_v15, %v317_v15  ;;  %554 = vrot.lane.b32.xlu2 %v936_v16, %s852_s13 }
  0xa2   : > { %394 = vrot.lane.b32.xlu1 %v938_v17, %s853_s14  ;;  %v473_v21 = vpack.c.b16 %v472_v20, %v472_v20 }
  0xa3   : > { %319 = vrot.lane.b32.xlu0 %v318_v18, %s854_s15 }
  0xa9   : > { %476 = vrot.lane.b32.xlu2 %v473_v21, %s855_s16 }
  0xaa   : > { %556 = vrot.lane.b32.xlu1 %v936_v16, %s856_s17 }
  0xab   : > { %396 = vrot.lane.b32.xlu0 %v938_v17, %s857_s18 }
  0xb3   : > { %474 = vrot.lane.b32.xlu0 %v473_v21, %s858_s19  ;;  %s273_s19 = scalar_lea.vmem %s1017_s7, %s767_s30 }
  0xfb   : > { %v555_v22 = vpop.permute.xlu2 %554 }
 0x103   : > { %v477_v23 = vpop.permute.xlu2 %476 }
 0x104   : > { %v482_v24 = vsel %vm321_vm2, %v477_v23, 0 }
 0x105   : > { %491 = vmatpush.bf16.xpose.msrb.mxu0 %v482_v24 }
 0x114   : > { %v395_v25 = vpop.permute.xlu1 %394 }
 0x115   : > { %v320_v26 = vpop.permute.xlu0 %319 }
 0x116   : > { %v326_v27 = vsel %vm321_vm2, %v320_v26, 0 }
 0x117   : > { %335 = vmatpush.bf16.xpose.msra.mxu1 %v326_v27 }
 0x11c   : > { %v557_v28 = vpop.permute.xlu1 %556 }
 0x11d   : > { %v397_v29 = vpop.permute.xlu0 %396  ;;  %v562_v30 = vsel %vm321_vm2, %v557_v28, 0 }
 0x11e   : > { %778 = vmatmul.msk.bf16.vlgmr.msra.gmra.mxu1 %vm321_vm2, %v315_v12  ;;  %v402_v31 = vsel %vm321_vm2, %v397_v29, 0 }
 0x11f   : > { %411 = vmatpush.bf16.xpose.msra.mxu3 %v402_v31 }
 0x125   : > { %v475_v32 = vpop.permute.xlu0 %474 }
 0x126   : > { %780 = vmatmul.msk.bf16.vlgmr.msra.gmra.mxu3 %vm321_vm2, %v395_v25  ;;  %782 = vmatmul.msk.bf16.vlgmr.msrb.gmra.mxu0 %vm321_vm2, %v475_v32 }
 0x127   : > { %571 = vmatpush.bf16.xpose.msrb.mxu3 %v562_v30 }
 0x136   : > { %784 = vmatmul.msk.bf16.vlgmr.msrb.gmra.mxu3 %vm321_vm2, %v555_v22 }
 0x19b   : > { %v337_v33 = vpop.f32.mrf.mxu1 }
 0x19c   : > { %v341_v34 = vmul.f32 0.35355338, %v337_v33 }
 0x19e   : > { %v342_v35 = vsel %vm321_vm2, %v341_v34, -inf }
 0x19f   : > { %343 = vmax.xlane.f32.xlu1 %v342_v35 }
 0x1a3   : > { %v339_v36 = vpop.f32.mrf.mxu1  ;;  %v493_v37 = vpop.f32.mrf.mxu0 }
 0x1a4   : > { %v497_v42 = vmul.f32 0.35355338, %v493_v37 }
 0x1a6   : > { %v498_v44 = vsel %vm321_vm2, %v497_v42, -inf }
 0x1a9   : > { %v413_v38 = vpop.f32.mrf.mxu3 }
 0x1aa   : > { %v417_v39 = vmul.f32 0.35355338, %v413_v38 }
 0x1ab   : > { %v495_v40 = vpop.f32.mrf.mxu0 }
 0x1ac   : > { %v418_v41 = vsel %vm321_vm2, %v417_v39, -inf }
 0x1ad   : > { %419 = vmax.xlane.f32.xlu2 %v418_v41 }
 0x1b1   : > { %v415_v43 = vpop.f32.mrf.mxu3 }
 0x1b5   : > { %499 = vmax.xlane.f32.xlu2 %v498_v44 }
 0x1b9   : > { %v573_v45 = vpop.f32.mrf.mxu3 }
 0x1ba   : > { %v577_v46 = vmul.f32 0.35355338, %v573_v45 }
 0x1bc   : > { %v578_v47 = vsel %vm321_vm2, %v577_v46, -inf }
 0x1bd   : > { %579 = vmax.xlane.f32.xlu0 %v578_v47 }
 0x1c1   : > { %v575_v48 = vpop.f32.mrf.mxu3 }
 0x1d1   : > { %367 = vrot.lane.b32.xlu0 %v318_v18, %s859_s20 }
 0x1d9   : > { %523 = vrot.lane.b32.xlu0 %v473_v21, %s860_s21 }
 0x212   : > { %v344_v49 = vpop.xlane.xlu1 %343 }
 0x213   : > { %v345_v50 = vsub.f32 %v341_v34, %v344_v49 }
 0x215   : > { %v346_v51 = vmul.f32 1.442695, %v345_v50 }
 0x217   : > { %824 = vpow2.f32 %v346_v51 }
 0x21d   : > { %v825_v52 = vpop.eup %824 }
 0x21e   : > { %v348_v53 = vsel %vm321_vm2, %v825_v52, 0.0 }
 0x21f   : > { %349 = vadd.xlane.f32.xlu1 %v348_v53 }
 0x220   : > { %v420_v54 = vpop.xlane.xlu2 %419 }
 0x221   : > { %v421_v55 = vsub.f32 %v417_v39, %v420_v54 }
 0x223   : > { %v422_v56 = vmul.f32 1.442695, %v421_v55 }
 0x225   : > { %826 = vpow2.f32 %v422_v56 }
 0x228   : > { %v500_v57 = vpop.xlane.xlu2 %499 }
 0x229   : > { %v501_v58 = vsub.f32 %v497_v42, %v500_v57 }
 0x22b   : > { %v957_v59 = vpop.eup %826  ;;  %v502_v60 = vmul.f32 1.442695, %v501_v58 }
 0x22c   : > { %v424_v61 = vsel %vm321_vm2, %v957_v59, 0.0 }
 0x22d   : > { %828 = vpow2.f32 %v502_v60  ;;  %425 = vadd.xlane.f32.xlu2 %v424_v61 }
 0x230   : > { %v580_v62 = vpop.xlane.xlu0 %579 }
 0x231   : > { %v581_v63 = vsub.f32 %v577_v46, %v580_v62 }
 0x233   : > { %v961_v0 = vpop.eup %828  ;;  %v582_v1 = vmul.f32 1.442695, %v581_v63 }
 0x234   : > { %v504_v3 = vsel %vm321_vm2, %v961_v0, 0.0 }
 0x235   : > { %830 = vpow2.f32 %v582_v1  ;;  %505 = vadd.xlane.f32.xlu1 %v504_v3 }
 0x23b   : > { %v965_v4 = vpop.eup %830 }
 0x23c   : > { %v584_v5 = vsel %vm321_vm2, %v965_v4, 0.0 }
 0x23d   : > { %585 = vadd.xlane.f32.xlu1 %v584_v5 }
 0x243   : > { %v368_v6 = vpop.permute.xlu0 %367 }
 0x244   : > { %v374_v7 = vsel %vm372_vm3, %v368_v6, 0 }
 0x245   : > { %443 = vrot.lane.b32.xlu2 %v938_v17, %s861_s22  ;;  %383 = vmatpush.bf16.msra.mxu2 %v374_v7 }
 0x24b   : > { %v524_v8 = vpop.permute.xlu0 %523 }
 0x24c   : > { %v529_v9 = vsel %vm372_vm3, %v524_v8, 0 }
 0x24d   : > { %538 = vmatpush.bf16.msrb.mxu1 %v529_v9 }
 0x256   : > { %603 = vrot.lane.b32.xlu1 %v936_v16, %s862_s23 }
 0x292   : > { %v350_v10 = vpop.xlane.xlu1 %349 }
 0x293   : > { %832 = vrcp.f32 %v350_v10  ;;  %v362_v14 = vand.u32 2147483648, %v350_v10  ;;  %v360_v18 = vand.u32 2147483647, %v350_v10  ;;  %vm356_vm5 = vweird.f32 %v350_v10 }
 0x295   : > { %v363_v20 = vor.u32 1.1754944e-38, %v362_v14  ;;  %vm361_vm7 = vcmp.eq.f32.partialorder %v360_v18, 8.507059e+37 }
 0x299   : > { %v833_v11 = vpop.eup %832 }
 0x29a   : > { %v352_v12 = vmul.f32 %v833_v11, %v350_v10  ;;  %vm357_vm4 = vweird.f32 %v833_v11 }
 0x29b   : > { %vm358_vm6 = vmor %vm356_vm5, %vm357_vm4 }
 0x29c   : > { %v353_v13 = vsub.f32 1.0, %v352_v12  ;;  %v799_v12 = vld [vmem:[%s1013_s3] sm:$0xff] }
 0x29e   : > { %v354_v15 = vmul.f32 %v833_v11, %v353_v13 }
 0x2a0   : > { %v426_v19 = vpop.xlane.xlu2 %425  ;;  %v355_v17 = vadd.f32 %v833_v11, %v354_v15 }
 0x2a1   : > { %834 = vrcp.f32 %v426_v19  ;;  %v438_v31 = vand.u32 2147483648, %v426_v19  ;;  %v436_v32 = vand.u32 2147483647, %v426_v19  ;;  %vm432_vm9 = vweird.f32 %v426_v19 }
 0x2a2   : > { %v359_v21 = vsel %vm358_vm6, %v833_v11, %v355_v17  ;;  %v800_v11 = vld [vmem:[%s1013_s3 + $0x8] sm:$0xff]  ;;  %v636_v17 = vld [vmem:[%s1014_s4] sm:$0x1] }
 0x2a3   : > { %v364_v22 = vsel %vm361_vm7, %v363_v20, %v359_v21  ;;  %v439_v35 = vor.u32 1.1754944e-38, %v438_v31  ;;  %vm437_vm11 = vcmp.eq.f32.partialorder %v436_v32, 8.507059e+37  ;;  %660 = vmatpush.bf16.msra.mxu0 %v800_v11  ;;  %vm628_vm7 = vcmask 261312  }
 0x2a4   : > { %v365_v23 = vmul.f32 %v825_v52, %v364_v22  ;;  %v637_v20 = vunpack.c.l.bf16 %v636_v17  ;;  %v667_v22 = vunpack.c.l.bf16 %v929_v2 }
 0x2a6   : > { %v366_v16 = vpack.c.bf16 %v365_v23, %v365_v23  ;;  %v638_v21 = vperm.slane %v637_v20, 0 }
 0x2a7   : > { %v835_v24 = vpop.eup %834  ;;  %661 = vmatpush.bf16.msra.mxu0 %v799_v12 }
 0x2a8   : > { %v428_v25 = vmul.f32 %v835_v24, %v426_v19  ;;  %v506_v26 = vpop.xlane.xlu1 %505  ;;  %v444_v27 = vpop.permute.xlu2 %443  ;;  %779 = vmatmul.msk.bf16.vlgmr.msra.gmra.mxu2 %vm321_vm2, %v366_v16  ;;  %vm433_vm8 = vweird.f32 %v835_v24 }
 0x2a9   : > { %836 = vrcp.f32 %v506_v26  ;;  %v449_v29 = vsel %vm372_vm3, %v444_v27, 0  ;;  %vm434_vm10 = vmor %vm432_vm9, %vm433_vm8  ;;  %v518_v41 = vand.u32 2147483648, %v506_v26  ;;  %v516_v44 = vand.u32 2147483647, %v506_v26 }
 0x2aa   : > { %v429_v28 = vsub.f32 1.0, %v428_v25  ;;  %458 = vmatpush.bf16.msrb.mxu2 %v449_v29  ;;  %vm512_vm13 = vweird.f32 %v506_v26  ;;  %v866_v27 = vmov 32.0  }
 0x2ab   : > { %v519_v48 = vor.u32 1.1754944e-38, %v518_v41  ;;  %vm517_vm15 = vcmp.eq.f32.partialorder %v516_v44, 8.507059e+37 }
 0x2ac   : > { %v430_v30 = vmul.f32 %v835_v24, %v429_v28 }
 0x2ae   : > { %v431_v33 = vadd.f32 %v835_v24, %v430_v30 }
 0x2af   : > { %v837_v34 = vpop.eup %836 }
 0x2b0   : > { %v508_v36 = vmul.f32 %v837_v34, %v506_v26  ;;  %v586_v37 = vpop.xlane.xlu1 %585  ;;  %v435_v38 = vsel %vm434_vm10, %v835_v24, %v431_v33  ;;  %vm513_vm12 = vweird.f32 %v837_v34 }
 0x2b1   : > { %838 = vrcp.f32 %v586_v37  ;;  %v440_v40 = vsel %vm437_vm11, %v439_v35, %v435_v38  ;;  %vm514_vm14 = vmor %vm512_vm13, %vm513_vm12  ;;  %v598_v57 = vand.u32 2147483648, %v586_v37  ;;  %vm592_vm4 = vweird.f32 %v586_v37 }
 0x2b2   : > { %v509_v39 = vsub.f32 1.0, %v508_v36  ;;  %v441_v42 = vmul.f32 %v957_v59, %v440_v40  ;;  %v596_v58 = vand.u32 2147483647, %v586_v37  ;;  %840 = vrcp.f32 %v866_v27 }
 0x2b3   : > { %v599_v60 = vor.u32 1.1754944e-38, %v598_v57  ;;  %vm707_vm11 = vcmask 257024  }
 0x2b4   : > { %v510_v43 = vmul.f32 %v837_v34, %v509_v39  ;;  %v442_v46 = vpack.c.bf16 %v441_v42, %v441_v42  ;;  %vm597_vm6 = vcmp.eq.f32.partialorder %v596_v58, 8.507059e+37 }
 0x2b6   : > { %v511_v45 = vadd.f32 %v837_v34, %v510_v43  ;;  %v698_v43 = vld [vmem:[%s1015_s5] sm:$0x1] }
 0x2b7   : > { %v839_v47 = vpop.eup %838 }
 0x2b8   : > { %v588_v49 = vmul.f32 %v839_v47, %v586_v37  ;;  %781 = vmatmul.msk.bf16.vlgmr.msrb.gmra.mxu2 %vm321_vm2, %v442_v46  ;;  %v515_v50 = vsel %vm514_vm14, %v837_v34, %v511_v45  ;;  %vm593_vm1 = vweird.f32 %v839_v47  ;;  %v841_v28 = vpop.eup %840  ;;  %v702_v45 = vld [vmem:[%s1016_s6] sm:$0x1] }
 0x2b9   : > { %v520_v51 = vsel %vm517_vm15, %v519_v48, %v515_v50  ;;  %vm594_vm5 = vmor %vm592_vm4, %vm593_vm1  ;;  %v673_v29 = vmul.f32 32.0, %v841_v28  ;;  %vm677_vm8 = vweird.f32 %v841_v28 }
 0x2ba   : > { %v589_v52 = vsub.f32 1.0, %v588_v49  ;;  %v521_v53 = vmul.f32 %v961_v0, %v520_v51  ;;  %v703_v49 = vunpack.c.l.bf16 %v702_v45 }
 0x2bb   : > { %v674_v30 = vsub.f32 1.0, %v673_v29 }
 0x2bc   : > { %v590_v54 = vmul.f32 %v839_v47, %v589_v52  ;;  %v522_v55 = vpack.c.bf16 %v521_v53, %v521_v53  ;;  %v704_v53 = vperm.slane %v703_v49, 0 }
 0x2bd   : > { %v675_v31 = vmul.f32 %v841_v28, %v674_v30 }
 0x2be   : > { %v591_v56 = vadd.f32 %v839_v47, %v590_v54  ;;  %783 = vmatmul.msk.bf16.vlgmr.msrb.gmra.mxu1 %vm321_vm2, %v522_v55 }
 0x2bf   : > { %v676_v32 = vadd.f32 %v841_v28, %v675_v31 }
 0x2c0   : > { %v595_v59 = vsel %vm594_vm5, %v839_v47, %v591_v56  ;;  %v699_v47 = vunpack.c.l.bf16 %v698_v43 }
 0x2c1   : > { %v600_v61 = vsel %vm597_vm6, %v599_v60, %v595_v59  ;;  %v678_v33 = vsel %vm677_vm8, %v841_v28, %v676_v32 }
 0x2c2   : > { %v601_v62 = vmul.f32 %v965_v4, %v600_v61  ;;  %v700_v51 = vperm.slane %v699_v47, 0 }
 0x2c4   : > { %v602_v0 = vpack.c.bf16 %v601_v62, %v601_v62 }
 0x2c8   : > { %v604_v63 = vpop.permute.xlu1 %603 }
 0x2c9   : > { %v609_v1 = vsel %vm372_vm3, %v604_v63, 0  ;;  %vm548_vm3 = vcmask 195712  }
 0x2ca   : > { %618 = vmatpush.bf16.msra.mxu2 %v609_v1 }
 0x2cd   : > { %785 = vmatmul.msk.bf16.vlgmr.msra.gmra.mxu2 %vm321_vm2, %v602_v0 }
 0x32b   : > { %v385_v3 = vpop.f32.mrf.mxu2 }
 0x32c   : > { %389 = vst.msk [vmem:[#allocation3] sm:$0xff] %vm321_vm2, %v385_v3  ;;  %vm468_vm2 = vcmask 130112  }
 0x333   : > { %v387_v5 = vpop.f32.mrf.mxu2 }
 0x33b   : > { %v460_v6 = vpop.f32.mrf.mxu2  ;;  %v540_v7 = vpop.f32.mrf.mxu1 }
 0x33c   : > { %465 = vrot.lane.b32.xlu0 %v460_v6, %s863_s26  ;;  %545 = vrot.lane.b32.xlu2 %v540_v7, %s864_s27 }
 0x343   : > { %v462_v8 = vpop.f32.mrf.mxu2  ;;  %v542_v9 = vpop.f32.mrf.mxu1 }
 0x350   : > { %v620_v4 = vpop.f32.mrf.mxu2 }
 0x351   : > { %625 = vrot.lane.b32.xlu0 %v620_v4, %s865_s28 }
 0x358   : > { %v622_v10 = vpop.f32.mrf.mxu2 }
 0x396   : > { %v546_v14 = vpop.permute.xlu2 %545 }
 0x3ae   : > { %v466_v13 = vpop.permute.xlu0 %465 }
 0x3af   : > { %469 = vst.msk [vmem:[#allocation3] sm:$0xff] %vm468_vm2, %v466_v13 }
 0x3b0   : > { %549 = vst.msk [vmem:[#allocation3] sm:$0xff] %vm548_vm3, %v546_v14 }
 0x3c3   : > { %v626_v15 = vpop.permute.xlu0 %625 }
 0x3c4   : > { %629 = vst.msk [vmem:[#allocation3] sm:$0xff] %vm628_vm7, %v626_v15 }
 0x3cb   : > { %v630_v18 = vld [vmem:[#allocation3] sm:$0xff] }
 0x3cc   : > { %v631_v19 = vpack.c.bf16 %v630_v18, %v630_v18 }
 0x3ce   : > { %794 = vmatmul.msk.bf16.vlgmr.msra.gmra.mxu0 %vm295_vm0, %v631_v19 }
 0x44b   : > { %v663_v23 = vpop.f32.mrf.mxu0 }
 0x44c   : > { %v664_v16 = vadd.f32 %v663_v23, %v638_v21 }
 0x44e   : > { %v668_v24 = vadd.f32 %v667_v22, %v664_v16 }
 0x450   : > { %v669_v25 = vsel %vm295_vm0, %v668_v24, 0.0 }
 0x451   : > { %670 = vadd.xlane.f32.xlu2 %v669_v25 }
 0x453   : > { %v665_v26 = vpop.f32.mrf.mxu0 }
 0x4c4   : > { %v671_v34 = vpop.xlane.xlu2 %670 }
 0x4c5   : > { %v679_v35 = vmul.f32 %v678_v33, %v671_v34 }
 0x4c7   : > { %v680_v36 = vsub.f32 %v668_v24, %v679_v35 }
 0x4c9   : > { %v681_v2 = vmul.f32 %v680_v36, %v680_v36 }
 0x4cb   : > { %v682_v37 = vsel %vm295_vm0, %v681_v2, 0.0 }
 0x4cc   : > { %683 = vadd.xlane.f32.xlu1 %v682_v37 }
 0x53f   : > { %v684_v38 = vpop.xlane.xlu1 %683 }
 0x540   : > { %v685_v39 = vmul.f32 %v684_v38, %v678_v33 }
 0x542   : > { %v686_v40 = vadd.f32 1e-12, %v685_v39 }
 0x544   : > { %842 = vrsqrt.f32 %v686_v40  ;;  %vm693_vm9 = vweird.f32 %v686_v40 }
 0x54a   : > { %v843_v41 = vpop.eup %842 }
 0x54b   : > { %v688_v42 = vmul.f32 %v843_v41, %v686_v40  ;;  %vm694_vm0 = vweird.f32 %v843_v41 }
 0x54c   : > { %vm695_vm10 = vmor %vm693_vm9, %vm694_vm0 }
 0x54d   : > { %v689_v44 = vmul.f32 %v843_v41, %v688_v42 }
 0x54f   : > { %v690_v46 = vmul.f32 0.5, %v689_v44 }
 0x551   : > { %v691_v48 = vsub.f32 1.5, %v690_v46 }
 0x553   : > { %v692_v50 = vmul.f32 %v843_v41, %v691_v48 }
 0x555   : > { %v696_v52 = vsel %vm695_vm10, %v843_v41, %v692_v50 }
 0x556   : > { %v697_v54 = vmul.f32 %v696_v52, %v680_v36 }
 0x558   : > { %v701_v55 = vmul.f32 %v700_v51, %v697_v54 }
 0x55a   : > { %v705_v56 = vadd.f32 %v704_v53, %v701_v55 }
 0x55c   : > { %v706_v57 = vpack.c.bf16 %v705_v56, %v705_v56 }
 0x55e   : > { %708 = vst.msk [vmem:[%s273_s19] sm:$0xf] %vm707_vm11, %v706_v57 }
 0x55f PF: > { %s17_s24 = sadd.s32 1, %s850_s24  }
 0x560   : > { %p14_p4 = scmp.ge.s32.totalorder %s17_s24, 4  }
 0x562   :  { %16 = sbr.rel (!%p14_p4) target bundleno = 1 (0x1), region = 78 }

</bundles_post_ra>
